<compile_context>
chip_gen: v7x
topology: tpu7x:2x2x1
jax: 0.10.0
libtpu: 0.0.40
codegen_flags: <defaults>
</compile_context>

<pallas_src>
import functools
import math

import jax
import jax.numpy as jnp
from jax.experimental import pallas as pl
from jax.experimental.pallas import tpu as pltpu

HP = 128   # hidden channels padded to a full lane width
CP = 128   # classes padded to a full lane width
KP = 128   # patch depth (9*Cin + label lane) padded to a full lane width


def _round_up(x, m):
    return (x + m - 1) // m * m


# ------------------------------- fused kernel ------------------------------- #

def fused_seg_kernel(x_ref, we_ref, be_ref, wd_ref, bd_ref, out_ref, *, lbl_lane):
    """Per pixel-band: conv (as one im2col dot) + ReLU -> 1x1 conv -> softmax
    statistics -> NLL / pixel-accuracy partial sums.

    x_ref  : (1, R, KP) bf16  pixel rows; lanes [0, 9*Cin) hold the 3x3xCin patch,
                              lane `lbl_lane` holds the label (exact small int),
                              remaining lanes are zero.
    we_ref : (KP, HP) bf16    conv weights; rows >= 9*Cin are zero.
    be_ref : (1, HP)  f32
    wd_ref : (HP, CP) bf16
    bd_ref : (1, CP)  f32     padded class lanes hold -1e30.
    out_ref: (1, 8, 128) f32  lanes 0/1/2 hold (loss, correct, valid) partial sums.
    """
    x = x_ref[0]                                                     # (R, KP) bf16

    # Encoder: one dense K=128 MXU dot (im2col is already in lanes) + bias + ReLU.
    h = jnp.dot(x, we_ref[...], preferred_element_type=jnp.float32) + be_ref[...]
    h = jnp.maximum(h, 0.0)                                          # (R, HP) f32

    # Decoder: 1x1 conv as a second dense MXU dot.
    logits = jnp.dot(h.astype(jnp.bfloat16), wd_ref[...],
                     preferred_element_type=jnp.float32) + bd_ref[...]   # (R, CP)

    # log_softmax statistics only — the full log-prob map is never materialized:
    #   logp[label] = (logits[label] - m) - lse,   argmax(logp) == argmax(logits).
    m = jnp.max(logits, axis=-1, keepdims=True)                      # (R, 1)
    z = logits - m
    lse = jnp.log(jnp.sum(jnp.exp(z), axis=-1, keepdims=True))       # (R, 1)
    # TODO(synk): on v6e/v7x the exp could run in bf16; kept f32 for v5e's EUP.

    # Labels ride in a spare lane of the patch block (exact integers in bf16).
    lab = x[:, lbl_lane:lbl_lane + 1].astype(jnp.float32)            # (R, 1)
    valid = lab >= 0.0

    R, C = logits.shape
    clsf = jax.lax.broadcasted_iota(jnp.int32, (R, C), 1).astype(jnp.float32)
    onehot = clsf == lab                                             # (R, CP)
    z_at_label = jnp.sum(jnp.where(onehot, z, 0.0), axis=-1, keepdims=True)
    loss_s = jnp.sum(jnp.where(valid, lse - z_at_label, 0.0))

    # argmax with lowest-index tie-break, reusing the softmax max m.
    preds = jnp.min(jnp.where(logits == m, clsf, float(C)), axis=-1, keepdims=True)
    correct = jnp.logical_and(preds == lab, valid)
    acc_s = jnp.sum(correct.astype(jnp.float32))
    valid_s = jnp.sum(valid.astype(jnp.float32))

    lane = jax.lax.broadcasted_iota(jnp.int32, (8, 128), 1)
    out_ref[0] = (jnp.where(lane == 0, loss_s, 0.0)
                  + jnp.where(lane == 1, acc_s, 0.0)
                  + jnp.where(lane == 2, valid_s, 0.0))


# -------------------------------- JAX wrapper -------------------------------- #

def _choose_band(H, W, rows_target):
    # TH rows of the image per band such that R = TH*W is sublane-aligned
    # (multiple of 8) and large enough to amortize per-grid-step overhead.
    t0 = 8 // math.gcd(W, 8)
    TH = max(t0, (max(rows_target // W, 1)) // t0 * t0)
    TH = min(TH, _round_up(H, t0))
    Hpad = _round_up(H, TH)
    return TH, Hpad


def segmentation_module_forward(img_nchw, seg_label, params, *, rows_per_band=1024):
    x = jnp.transpose(img_nchw, (0, 2, 3, 1)).astype(jnp.float32)    # NCHW -> NHWC
    N, H, W, Cin = x.shape
    hidden = params["w_enc"].shape[-1]
    C = params["w_dec"].shape[-1]
    KD = 9 * Cin
    assert hidden <= HP and C <= CP and KD + 1 <= KP
    assert C <= 256, "labels ride in a bf16 lane; class ids must be exact in bf16"

    TH, Hpad = _choose_band(H, W, rows_per_band)
    NB = Hpad // TH
    R = TH * W
    G = N * NB

    # --- wrapper-side im2col + label lane (single fused XLA preamble) ---
    # Ragged H is handled by padding to a band multiple with label = -1 (ignored).
    lab = jnp.pad(seg_label.astype(jnp.int32), ((0, 0), (0, Hpad - H), (0, 0)),
                  constant_values=-1)                                # (N, Hpad, W)
    xe = jnp.pad(x, ((0, 0), (0, Hpad - H), (0, 0), (0, 0)))
    xe = jnp.pad(xe, ((0, 0), (1, 1), (1, 1), (0, 0)))               # (N, Hpad+2, W+2, Cin)
    patches = jnp.stack([xe[:, dy:dy + Hpad, dx:dx + W, :]
                         for dy in range(3) for dx in range(3)], axis=3)
    patches = patches.reshape(N, Hpad * W, KD)                       # lane = tap*Cin + c
    xcol = jnp.concatenate(
        [patches, lab.reshape(N, Hpad * W, 1).astype(jnp.float32)], axis=-1)
    xcol = jnp.pad(xcol, ((0, 0), (0, 0), (0, KP - (KD + 1))))
    xcol = xcol.astype(jnp.bfloat16).reshape(G, R, KP)               # dense 128-lane rows

    # --- weights padded to full (128,128) lane tiles; padded classes get -1e30 bias ---
    w_enc = jnp.pad(params["w_enc"].reshape(KD, hidden),
                    ((0, KP - KD), (0, HP - hidden))).astype(jnp.bfloat16)
    b_enc = jnp.pad(params["b_enc"].astype(jnp.float32), (0, HP - hidden)).reshape(1, HP)
    w_dec = jnp.pad(params["w_dec"], ((0, HP - hidden), (0, CP - C))).astype(jnp.bfloat16)
    b_dec = jnp.pad(params["b_dec"].astype(jnp.float32), (0, CP - C),
                    constant_values=-1e30).reshape(1, CP)

    kernel = functools.partial(fused_seg_kernel, lbl_lane=KD)
    partials = pl.pallas_call(
        kernel,
        grid=(G,),
        out_shape=jax.ShapeDtypeStruct((G, 8, 128), jnp.float32),
        in_specs=[
            pl.BlockSpec((1, R, KP), lambda g: (g, 0, 0)),   # per-band pixel rows
            pl.BlockSpec((KP, HP), lambda g: (0, 0)),        # grid-invariant weights
            pl.BlockSpec((1, HP), lambda g: (0, 0)),          # (tiny; Pallas skips re-DMA
            pl.BlockSpec((HP, CP), lambda g: (0, 0)),         #  for unchanged block idx)
            pl.BlockSpec((1, CP), lambda g: (0, 0)),
        ],
        out_specs=pl.BlockSpec((1, 8, 128), lambda g: (g, 0, 0)),
        compiler_params=pltpu.CompilerParams(
            dimension_semantics=("parallel",),
            vmem_limit_bytes=48 * 1024 * 1024),
    )(xcol, w_enc, b_enc, w_dec, b_dec)

    # Tiny reduction of per-band partial sums (3 scalars each).
    loss_sum = jnp.sum(partials[:, 0, 0])
    acc_sum = jnp.sum(partials[:, 0, 1])
    valid_sum = jnp.sum(partials[:, 0, 2])
    loss = loss_sum / valid_sum              # NLLLoss mean over valid (NaN if none, as torch)
    acc = acc_sum / (valid_sum + 1e-10)      # pixel_acc
    return loss, acc


# ------------------------------ pure-JAX reference ---------------------------- #

def _reference_forward(img_nchw, seg_label, params):
    x = jnp.transpose(img_nchw, (0, 2, 3, 1)).astype(jnp.float32)
    feat = jax.lax.conv_general_dilated(
        x, params["w_enc"], window_strides=(1, 1), padding="SAME",
        dimension_numbers=("NHWC", "HWIO", "NHWC"))
    feat = jnp.maximum(feat + params["b_enc"], 0.0)
    logits = feat @ params["w_dec"] + params["b_dec"]
    logp = jax.nn.log_softmax(logits, axis=-1)
    lab = seg_label
    valid = lab >= 0
    nll = -jnp.take_along_axis(logp, jnp.where(valid, lab, 0)[..., None], axis=-1)[..., 0]
    loss = jnp.sum(jnp.where(valid, nll, 0.0)) / jnp.sum(valid).astype(jnp.float32)
    preds = jnp.argmax(logits, axis=-1)
    acc = (jnp.sum(valid & (preds == lab)).astype(jnp.float32)
           / (jnp.sum(valid).astype(jnp.float32) + 1e-10))
    return loss, acc


# ----------------------------------- main ------------------------------------ #

if __name__ == "__main__":
    N, Cin, H, W = 2, 4, 16, 16
    hidden, num_classes = 32, 8

    key = jax.random.PRNGKey(0)
    k_img, k_lab, k_we, k_be, k_wd, k_bd = jax.random.split(key, 6)

    img = jax.random.normal(k_img, (N, Cin, H, W), dtype=jnp.float32)
    # labels in [-1, num_classes); -1 is the ignore index
    seg_label = jax.random.randint(k_lab, (N, H, W), minval=-1, maxval=num_classes,
                                   dtype=jnp.int32)

    params = {
        "w_enc": 0.1 * jax.random.normal(k_we, (3, 3, Cin, hidden), dtype=jnp.float32),
        "b_enc": 0.01 * jax.random.normal(k_be, (hidden,), dtype=jnp.float32),
        "w_dec": 0.1 * jax.random.normal(k_wd, (hidden, num_classes), dtype=jnp.float32),
        "b_dec": 0.01 * jax.random.normal(k_bd, (num_classes,), dtype=jnp.float32),
    }

    # TODO(synk): deep_sup_scale branch (second decoder head) and the segSize
    # inference path are omitted; this is the deep_sup_scale=None training path.
    fwd = jax.jit(segmentation_module_forward)
    loss, acc = fwd(img, seg_label, params)
    jax.block_until_ready((loss, acc))

    loss_ref, acc_ref = _reference_forward(img, seg_label, params)
    assert bool(jnp.isfinite(loss)) and 0.0 <= float(acc) <= 1.0
    # bf16 matmul operands (f32 accumulation) -> allow small tolerance vs f32 reference.
    assert abs(float(loss) - float(loss_ref)) <= 0.05 * abs(float(loss_ref)) + 1e-2, \
        (float(loss), float(loss_ref))
    assert abs(float(acc) - float(acc_ref)) <= 0.05, (float(acc), float(acc_ref))
    print("KERNEL_OK")
</pallas_src>

<mosaic_0001>
module attributes {stable_mosaic.version = 11 : i64} {
  func.func @fused_seg_kernel(%arg0: i32, %arg1: memref<1x256x128xbf16, #tpu.memory_space<vmem>>, %arg2: memref<128x128xbf16, #tpu.memory_space<vmem>>, %arg3: memref<1x128xf32, #tpu.memory_space<vmem>>, %arg4: memref<128x128xbf16, #tpu.memory_space<vmem>>, %arg5: memref<1x128xf32, #tpu.memory_space<vmem>>, %arg6: memref<1x8x128xf32, #tpu.memory_space<vmem>>) attributes {dimension_semantics = [#tpu.dimension_semantics<parallel>], iteration_bounds = array<i64: 2>, scalar_prefetch = 0 : i64, scratch_operands = 0 : i64, tpu.core_type = #tpu.core_type<tc>, window_params = [{transform_indices = @transform_0, window_bounds = array<i64: 1, 256, 128>}, {pipeline_mode = #tpu.pipeline_mode<synchronous>, transform_indices = @transform_1, window_bounds = array<i64: 128, 128>}, {pipeline_mode = #tpu.pipeline_mode<synchronous>, transform_indices = @transform_2, window_bounds = array<i64: 1, 128>}, {pipeline_mode = #tpu.pipeline_mode<synchronous>, transform_indices = @transform_3, window_bounds = array<i64: 128, 128>}, {pipeline_mode = #tpu.pipeline_mode<synchronous>, transform_indices = @transform_4, window_bounds = array<i64: 1, 128>}, {transform_indices = @transform_5, window_bounds = array<i64: 1, 8, 128>}]} {
    %c0 = arith.constant 0 : index
    %c0_0 = arith.constant 0 : index
    %c0_1 = arith.constant 0 : index
    %0 = vector.load %arg1[%c0, %c0_0, %c0_1] : memref<1x256x128xbf16, #tpu.memory_space<vmem>>, vector<1x256x128xbf16>
    %1 = vector.shape_cast %0 : vector<1x256x128xbf16> to vector<256x128xbf16>
    %c0_2 = arith.constant 0 : index
    %c0_3 = arith.constant 0 : index
    %2 = vector.load %arg2[%c0_2, %c0_3] : memref<128x128xbf16, #tpu.memory_space<vmem>>, vector<128x128xbf16>
    %cst = arith.constant dense<0.000000e+00> : vector<256x128xf32>
    %3 = tpu.matmul %1, %2, %cst {dimension_numbers = #tpu.dot_dimension_numbers<[1], [0], [0], [1], [0, 0, 1, 1], [], []>} : vector<256x128xbf16>, vector<128x128xbf16>, vector<256x128xf32> -> vector<256x128xf32>
    %c0_4 = arith.constant 0 : index
    %c0_5 = arith.constant 0 : index
    %4 = vector.load %arg3[%c0_4, %c0_5] : memref<1x128xf32, #tpu.memory_space<vmem>>, vector<1x128xf32>
    %5 = vector.broadcast %4 : vector<1x128xf32> to vector<256x128xf32>
    %6 = arith.addf %3, %5 : vector<256x128xf32>
    %cst_6 = arith.constant 0.000000e+00 : f32
    %7 = vector.broadcast %cst_6 : f32 to vector<256x128xf32>
    %8 = arith.maximumf %6, %7 : vector<256x128xf32>
    %9 = arith.truncf %8 : vector<256x128xf32> to vector<256x128xbf16>
    %c0_7 = arith.constant 0 : index
    %c0_8 = arith.constant 0 : index
    %10 = vector.load %arg4[%c0_7, %c0_8] : memref<128x128xbf16, #tpu.memory_space<vmem>>, vector<128x128xbf16>
    %cst_9 = arith.constant dense<0.000000e+00> : vector<256x128xf32>
    %11 = tpu.matmul %9, %10, %cst_9 {dimension_numbers = #tpu.dot_dimension_numbers<[1], [0], [0], [1], [0, 0, 1, 1], [], []>} : vector<256x128xbf16>, vector<128x128xbf16>, vector<256x128xf32> -> vector<256x128xf32>
    %c0_10 = arith.constant 0 : index
    %c0_11 = arith.constant 0 : index
    %12 = vector.load %arg5[%c0_10, %c0_11] : memref<1x128xf32, #tpu.memory_space<vmem>>, vector<1x128xf32>
    %13 = vector.broadcast %12 : vector<1x128xf32> to vector<256x128xf32>
    %14 = arith.addf %11, %13 : vector<256x128xf32>
    %cst_12 = arith.constant dense<0xFF800000> : vector<256xf32>
    %15 = vector.multi_reduction <maximumf>, %14, %cst_12 [1] : vector<256x128xf32> to vector<256xf32>
    %16 = vector.shape_cast %15 : vector<256xf32> to vector<256x1xf32>
    %17 = vector.broadcast %16 : vector<256x1xf32> to vector<256x128xf32>
    %18 = arith.subf %14, %17 : vector<256x128xf32>
    %19 = math.exp %18 : vector<256x128xf32>
    %cst_13 = arith.constant dense<0.000000e+00> : vector<256xf32>
    %20 = vector.multi_reduction <add>, %19, %cst_13 [1] : vector<256x128xf32> to vector<256xf32>
    %21 = vector.shape_cast %20 : vector<256xf32> to vector<256x1xf32>
    %22 = math.log %21 : vector<256x1xf32>
    %23 = vector.extract_strided_slice %1 {offsets = [0, 36], sizes = [256, 1], strides = [1, 1]} : vector<256x128xbf16> to vector<256x1xbf16>
    %24 = arith.extf %23 : vector<256x1xbf16> to vector<256x1xf32>
    %cst_14 = arith.constant 0.000000e+00 : f32
    %25 = vector.broadcast %cst_14 : f32 to vector<256x1xf32>
    %26 = arith.cmpf oge, %24, %25 : vector<256x1xf32>
    %27 = tpu.iota {dimensions = array<i32: 1>} : vector<256x128xi32>
    %28 = arith.sitofp %27 : vector<256x128xi32> to vector<256x128xf32>
    %29 = vector.broadcast %24 : vector<256x1xf32> to vector<256x128xf32>
    %30 = arith.cmpf oeq, %28, %29 : vector<256x128xf32>
    %cst_15 = arith.constant 0.000000e+00 : f32
    %31 = vector.broadcast %cst_15 : f32 to vector<256x128xf32>
    %32 = arith.select %30, %18, %31 : vector<256x128xi1>, vector<256x128xf32>
    %cst_16 = arith.constant dense<0.000000e+00> : vector<256xf32>
    %33 = vector.multi_reduction <add>, %32, %cst_16 [1] : vector<256x128xf32> to vector<256xf32>
    %34 = vector.shape_cast %33 : vector<256xf32> to vector<256x1xf32>
    %35 = arith.subf %22, %34 : vector<256x1xf32>
    %cst_17 = arith.constant 0.000000e+00 : f32
    %36 = vector.broadcast %cst_17 : f32 to vector<256x1xf32>
    %37 = arith.select %26, %35, %36 : vector<256x1xi1>, vector<256x1xf32>
    %38 = vector.shape_cast %37 : vector<256x1xf32> to vector<1x256x1xf32>
    %cst_18 = arith.constant dense<0.000000e+00> : vector<1xf32>
    %39 = vector.multi_reduction <add>, %38, %cst_18 [1, 2] : vector<1x256x1xf32> to vector<1xf32>
    %40 = vector.shape_cast %39 : vector<1xf32> to vector<1x1x1xf32>
    %41 = vector.extract %40[0, 0, 0] : f32 from vector<1x1x1xf32>
    %42 = vector.broadcast %16 : vector<256x1xf32> to vector<256x128xf32>
    %43 = arith.cmpf oeq, %14, %42 : vector<256x128xf32>
    %cst_19 = arith.constant 1.280000e+02 : f32
    %44 = vector.broadcast %cst_19 : f32 to vector<256x128xf32>
    %45 = arith.select %43, %28, %44 : vector<256x128xi1>, vector<256x128xf32>
    %cst_20 = arith.constant dense<0x7F800000> : vector<256xf32>
    %46 = vector.multi_reduction <minimumf>, %45, %cst_20 [1] : vector<256x128xf32> to vector<256xf32>
    %47 = vector.shape_cast %46 : vector<256xf32> to vector<256x1xf32>
    %48 = arith.cmpf oeq, %47, %24 : vector<256x1xf32>
    %49 = arith.andi %48, %26 : vector<256x1xi1>
    %50 = arith.extui %49 : vector<256x1xi1> to vector<256x1xi32>
    %51 = arith.sitofp %50 : vector<256x1xi32> to vector<256x1xf32>
    %52 = vector.shape_cast %51 : vector<256x1xf32> to vector<1x256x1xf32>
    %cst_21 = arith.constant dense<0.000000e+00> : vector<1xf32>
    %53 = vector.multi_reduction <add>, %52, %cst_21 [1, 2] : vector<1x256x1xf32> to vector<1xf32>
    %54 = vector.shape_cast %53 : vector<1xf32> to vector<1x1x1xf32>
    %55 = vector.extract %54[0, 0, 0] : f32 from vector<1x1x1xf32>
    %56 = arith.extui %26 : vector<256x1xi1> to vector<256x1xi32>
    %57 = arith.sitofp %56 : vector<256x1xi32> to vector<256x1xf32>
    %58 = vector.shape_cast %57 : vector<256x1xf32> to vector<1x256x1xf32>
    %cst_22 = arith.constant dense<0.000000e+00> : vector<1xf32>
    %59 = vector.multi_reduction <add>, %58, %cst_22 [1, 2] : vector<1x256x1xf32> to vector<1xf32>
    %60 = vector.shape_cast %59 : vector<1xf32> to vector<1x1x1xf32>
    %61 = vector.extract %60[0, 0, 0] : f32 from vector<1x1x1xf32>
    %62 = tpu.iota {dimensions = array<i32: 1>} : vector<8x128xi32>
    %c0_i32 = arith.constant 0 : i32
    %63 = vector.broadcast %c0_i32 : i32 to vector<8x128xi32>
    %64 = arith.cmpi eq, %62, %63 : vector<8x128xi32>
    %cst_23 = arith.constant 0.000000e+00 : f32
    %65 = vector.broadcast %41 : f32 to vector<8x128xf32>
    %66 = vector.broadcast %cst_23 : f32 to vector<8x128xf32>
    %67 = arith.select %64, %65, %66 : vector<8x128xi1>, vector<8x128xf32>
    %c1_i32 = arith.constant 1 : i32
    %68 = vector.broadcast %c1_i32 : i32 to vector<8x128xi32>
    %69 = arith.cmpi eq, %62, %68 : vector<8x128xi32>
    %cst_24 = arith.constant 0.000000e+00 : f32
    %70 = vector.broadcast %55 : f32 to vector<8x128xf32>
    %71 = vector.broadcast %cst_24 : f32 to vector<8x128xf32>
    %72 = arith.select %69, %70, %71 : vector<8x128xi1>, vector<8x128xf32>
    %73 = arith.addf %67, %72 : vector<8x128xf32>
    %c2_i32 = arith.constant 2 : i32
    %74 = vector.broadcast %c2_i32 : i32 to vector<8x128xi32>
    %75 = arith.cmpi eq, %62, %74 : vector<8x128xi32>
    %cst_25 = arith.constant 0.000000e+00 : f32
    %76 = vector.broadcast %61 : f32 to vector<8x128xf32>
    %77 = vector.broadcast %cst_25 : f32 to vector<8x128xf32>
    %78 = arith.select %75, %76, %77 : vector<8x128xi1>, vector<8x128xf32>
    %79 = arith.addf %73, %78 : vector<8x128xf32>
    %c0_26 = arith.constant 0 : index
    %c0_27 = arith.constant 0 : index
    %c0_28 = arith.constant 0 : index
    %80 = vector.load %arg6[%c0_26, %c0_27, %c0_28] : memref<1x8x128xf32, #tpu.memory_space<vmem>>, vector<1x8x128xf32>
    %81 = vector.shape_cast %80 : vector<1x8x128xf32> to vector<8x128xf32>
    %82 = vector.shape_cast %79 : vector<8x128xf32> to vector<1x8x128xf32>
    tpu.vector_store %arg6[%c0_26, %c0_27, %c0_28], %82 {strides = array<i32>} : memref<1x8x128xf32, #tpu.memory_space<vmem>>, vector<1x8x128xf32>,
    return
  }
  func.func @transform_0(%arg0: i32) -> (i32, i32, i32) {
    %c0_i32 = arith.constant 0 : i32
    %c0_i32_0 = arith.constant 0 : i32
    %c0_i32_1 = arith.constant 0 : i32
    return %arg0, %c0_i32, %c0_i32_0 : i32, i32, i32
  }
  func.func @transform_1(%arg0: i32) -> (i32, i32) {
    %c0_i32 = arith.constant 0 : i32
    %c0_i32_0 = arith.constant 0 : i32
    %c0_i32_1 = arith.constant 0 : i32
    return %c0_i32, %c0_i32_0 : i32, i32
  }
  func.func @transform_2(%arg0: i32) -> (i32, i32) {
    %c0_i32 = arith.constant 0 : i32
    %c0_i32_0 = arith.constant 0 : i32
    %c0_i32_1 = arith.constant 0 : i32
    return %c0_i32, %c0_i32_0 : i32, i32
  }
  func.func @transform_3(%arg0: i32) -> (i32, i32) {
    %c0_i32 = arith.constant 0 : i32
    %c0_i32_0 = arith.constant 0 : i32
    %c0_i32_1 = arith.constant 0 : i32
    return %c0_i32, %c0_i32_0 : i32, i32
  }
  func.func @transform_4(%arg0: i32) -> (i32, i32) {
    %c0_i32 = arith.constant 0 : i32
    %c0_i32_0 = arith.constant 0 : i32
    %c0_i32_1 = arith.constant 0 : i32
    return %c0_i32, %c0_i32_0 : i32, i32
  }
  func.func @transform_5(%arg0: i32) -> (i32, i32, i32) {
    %c0_i32 = arith.constant 0 : i32
    %c0_i32_0 = arith.constant 0 : i32
    %c0_i32_1 = arith.constant 0 : i32
    return %arg0, %c0_i32, %c0_i32_0 : i32, i32, i32
  }
}

</mosaic_0001>

<bundles_post_ra>
// kernel: segmentation_module_forward.1
= control target key start
LH: loop header
LB: loop body
LE: loop exit
PB: predicated region body
PF: predicated region fallthrough
CT: control target
= control target key end

     0   :  { %s3281_s18 = smov 0   ;;  %s4638_s0 = inlined_call_operand.vmem [shape: bf16[2,256,128], index: 0, kind: input, shape index: {}]   ;;  %s4639_s1 = inlined_call_operand.vmem [shape: bf16[128,128], index: 1, kind: input, shape index: {}]   ;;  %s4640_s2 = inlined_call_operand.vmem [shape: f32[1,128], index: 2, kind: input, shape index: {}]   ;;  %s4641_s3 = inlined_call_operand.vmem [shape: bf16[128,128], index: 3, kind: input, shape index: {}]   ;;  %s4642_s4 = inlined_call_operand.vmem [shape: f32[1,128], index: 4, kind: input, shape index: {}]   ;;  %s4643_s5 = inlined_call_operand.vmem [shape: f32[2,8,128], index: 5, kind: output, shape index: {}]  }
   0x1 LB: > { %s2557_s19 = sadd.s32 4294967295, %s3246_s18   ;;  %p2561_p0 = scmp.ge.s32.totalorder %s3246_s18, 1  ;;  %s3246_s18 = sphi %s3281_s18, %s15_s18  }
   0x2   : > { %p187_p1 = scmp.lt.s32.totalorder %s3246_s18, 3 }
   0x4   : > { %p188_p2 = pnand %p2561_p0, %p187_p1 }
   0x6   : > { %191 = sbr.rel (%p188_p2) target bundleno = 1319 (0x527), region = 40 }
   0xd   : > { %v3064_v0 = vld [vmem:[%s4639_s1] sm:$0xff]   ;;  %p214_p3 = scmp.lt.s32.totalorder %s2557_s19, 1  ;;  %v3065_v1 = vld [vmem:[%s4639_s1 + $0x8] sm:$0xff]   ;;  %v3066_v2 = vld [vmem:[%s4639_s1 + $0x10] sm:$0xff]   ;;  %v3248_v40 = vmov 36   ;;  %s3250_s12 = smov 92  }
   0xe   : > { %2714 = vmatprep.subr.bf16.mxu0 %v3064_v0  ;;  %v3067_v3 = vld [vmem:[%s4639_s1 + $0x18] sm:$0xff]   ;;  %v3068_v5 = vld [vmem:[%s4639_s1 + $0x20] sm:$0xff]   ;;  %v3089_v7 = vld [vmem:[%s4641_s3 + $0x8] sm:$0xff]   ;;  %2833 = vset.pattern.permute.xlu1 %v3248_v40 }
   0xf   : > { %s4769_s19 = smov (!%p214_p3, %s2557_s19), 1  ;;  %2715 = vmatpush3.bf16.msra.mxu0 %v3064_v0  ;;  %v3088_v6 = vld [vmem:[%s4641_s3] sm:$0xff]   ;;  %v3069_v8 = vld [vmem:[%s4639_s1 + $0x28] sm:$0xff]   ;;  %v3090_v9 = vld [vmem:[%s4641_s3 + $0x10] sm:$0xff]   ;;  %2827 = vset.pattern.permute.xlu0 %v3248_v40 }
  0x10   : > { %2716 = vmatprep.subr.bf16.mxu0 %v3065_v1  ;;  %s2665_s26 = sshll.u32 %s4769_s19, 7  ;;  %2762 = vmatprep.subr.bf16.mxu1 %v3088_v6  ;;  %v3070_v10 = vld [vmem:[%s4639_s1 + $0x30] sm:$0xff]   ;;  %v3091_v11 = vld [vmem:[%s4641_s3 + $0x18] sm:$0xff]   ;;  %v3092_v13 = vld [vmem:[%s4641_s3 + $0x20] sm:$0xff]   ;;  %s2564_s15 = sshll.u32 %s4769_s19, 3 }
  0x11   : > { %s3304_s29 = scalar_lea.vmem %s4638_s0, %s2665_s26  ;;  %2763 = vmatpush3.bf16.msra.mxu1 %v3088_v6  ;;  %v3071_v12 = vld [vmem:[%s4639_s1 + $0x38] sm:$0xff]   ;;  %v3093_v16 = vld [vmem:[%s4641_s3 + $0x28] sm:$0xff]   ;;  %v3094_v30 = vld [vmem:[%s4641_s3 + $0x30] sm:$0xff]   ;;  %s222_s21 = scalar_lea.vmem %s4643_s5, %s2564_s15 }
  0x12   : > { %v3310_v4 = vld [vmem:[%s3304_s29] sm:$0xff]   ;;  %2764 = vmatprep.subr.bf16.mxu1 %v3089_v7  ;;  %v226_v14 = vld [vmem:[%s3304_s29 + $0x8] sm:$0xff]   ;;  %v228_v15 = vld [vmem:[%s3304_s29 + $0x10] sm:$0xff]  }
  0x13   : > { %2717 = vmatpush3.bf16.msra.mxu0 %v3065_v1  ;;  %2730 = vmatprep.mubr.bf16.mxu0 %v3310_v4  ;;  %v230_v17 = vld [vmem:[%s3304_s29 + $0x18] sm:$0xff]   ;;  %v232_v18 = vld [vmem:[%s3304_s29 + $0x20] sm:$0xff]   ;;  %v234_v19 = vld [vmem:[%s3304_s29 + $0x28] sm:$0xff]   ;;  %v3383_v32 = vunpack.c.l.bf16 %v3310_v4  ;;  %v3386_v33 = vunpack.c.h.bf16 %v3310_v4  ;;  %v3388_v34 = vunpack.c.l.bf16 %v228_v15  ;;  %v3390_v35 = vunpack.c.h.bf16 %v228_v15 }
  0x14   : > { %2718 = vmatprep.subr.bf16.mxu0 %v3066_v2  ;;  %v3349_v20 = vld [vmem:[%s3304_s29 + $0x30] sm:$0xff]   ;;  %v3353_v21 = vld [vmem:[%s3304_s29 + $0x38] sm:$0xff]   ;;  %v3356_v22 = vld [vmem:[%s3304_s29 + $0x40] sm:$0xff]   ;;  %v3392_v36 = vunpack.c.l.bf16 %v226_v14  ;;  %v3394_v37 = vunpack.c.h.bf16 %v226_v14  ;;  %v3404_v43 = vunpack.c.l.bf16 %v230_v17  ;;  %v3406_v44 = vunpack.c.h.bf16 %v230_v17 }
  0x15   : > { %2765 = vmatpush3.bf16.msra.mxu1 %v3089_v7  ;;  %v242_v23 = vld [vmem:[%s3304_s29 + $0x48] sm:$0xff]   ;;  %v3362_v24 = vld [vmem:[%s3304_s29 + $0x50] sm:$0xff]   ;;  %v246_v25 = vld [vmem:[%s3304_s29 + $0x58] sm:$0xff]   ;;  %4706 = vst [vmem:[#allocation2_spill] sm:$0xff] %v3386_v33  ;;  %v2828_v42 = vpack.i.bf16 %v3386_v33, %v3383_v32  ;;  %v2839_v45 = vpack.i.bf16 %v3390_v35, %v3388_v34  ;;  %v3416_v49 = vunpack.c.l.bf16 %v232_v18  ;;  %v3418_v50 = vunpack.c.h.bf16 %v232_v18 }
  0x16   : > { %2766 = vmatprep.subr.bf16.mxu1 %v3090_v9  ;;  %v3367_v26 = vld [vmem:[%s3304_s29 + $0x60] sm:$0xff]   ;;  %v250_v27 = vld [vmem:[%s3304_s29 + $0x68] sm:$0xff]   ;;  %v3372_v28 = vld [vmem:[%s3304_s29 + $0x70] sm:$0xff]   ;;  %4707 = vst [vmem:[#allocation3_spill] sm:$0xff] %v3388_v34  ;;  %v3396_v38 = vunpack.c.l.bf16 %v242_v23  ;;  %v3398_v39 = vunpack.c.h.bf16 %v242_v23  ;;  %v2834_v41 = vpack.i.bf16 %v3394_v37, %v3392_v36  ;;  %v3410_v46 = vunpack.c.l.bf16 %v246_v25 }
  0x17   : > { %2719 = vmatpush3.bf16.msra.mxu0 %v3066_v2  ;;  %v254_v29 = vld [vmem:[%s3304_s29 + $0x78] sm:$0xff]   ;;  %4708 = vst [vmem:[#allocation4_spill] sm:$0xff] %v3390_v35  ;;  %4709 = vst [vmem:[#allocation5_spill] sm:$0xff] %v3394_v37  ;;  %v3412_v47 = vunpack.c.h.bf16 %v246_v25  ;;  %2829 = vperm.xlu0 %2827, %v2828_v42   ;;  %v2844_v51 = vpack.i.bf16 %v3406_v44, %v3404_v43  ;;  %v3422_v52 = vunpack.c.l.bf16 %v250_v27  ;;  %v3424_v53 = vunpack.c.h.bf16 %v250_v27 }
  0x18   : > { %2720 = vmatprep.subr.bf16.mxu0 %v3067_v3  ;;  %v3095_v31 = vld [vmem:[%s4641_s3 + $0x38] sm:$0xff]   ;;  %4710 = vst [vmem:[#allocation6_spill] sm:$0xff] %v3396_v38  ;;  %4711 = vst [vmem:[#allocation7_spill] sm:$0xff] %v3398_v39  ;;  %2835 = vperm.xlu1 %2833, %v2834_v41   ;;  %v2874_v48 = vpack.i.bf16 %v3398_v39, %v3396_v38  ;;  %v3428_v55 = vunpack.c.l.bf16 %v234_v19  ;;  %v3430_v56 = vunpack.c.h.bf16 %v234_v19  ;;  %v3434_v58 = vunpack.c.l.bf16 %v254_v29 }
  0x19   : > { %2767 = vmatpush3.bf16.msra.mxu1 %v3090_v9  ;;  %4712 = vst [vmem:[#allocation8_spill] sm:$0xff] %v3404_v43  ;;  %4713 = vst [vmem:[#allocation9_spill] sm:$0xff] %v3406_v44  ;;  %v2884_v54 = vpack.i.bf16 %v3412_v47, %v3410_v46  ;;  %v2849_v57 = vpack.i.bf16 %v3418_v50, %v3416_v49  ;;  %v3436_v59 = vunpack.c.h.bf16 %v254_v29  ;;  %v3441_v61 = vunpack.c.l.bf16 %v3349_v20 }
  0x1a   : > { %2768 = vmatprep.subr.bf16.mxu1 %v3091_v11  ;;  %4714 = vst [vmem:[#allocation10_spill] sm:$0xff] %v3410_v46  ;;  %4715 = vst [vmem:[#allocation11_spill] sm:$0xff] %v3412_v47  ;;  %v2894_v60 = vpack.i.bf16 %v3424_v53, %v3422_v52  ;;  %v3444_v62 = vunpack.c.h.bf16 %v3349_v20  ;;  %v2854_v63 = vpack.i.bf16 %v3430_v56, %v3428_v55  ;;  %v3451_v1 = vunpack.c.l.bf16 %v3353_v21 }
  0x1b   : > { %2721 = vmatpush3.bf16.msra.mxu0 %v3067_v3  ;;  %4716 = vst [vmem:[#allocation12_spill] sm:$0xff] %v3416_v49  ;;  %4717 = vst [vmem:[#allocation13_spill] sm:$0xff] %v3418_v50  ;;  %2875 = vperm.xlu0 %2827, %v2874_v48   ;;  %v2904_v0 = vpack.i.bf16 %v3436_v59, %v3434_v58  ;;  %v3454_v2 = vunpack.c.h.bf16 %v3353_v21  ;;  %v3459_v4 = vunpack.c.l.bf16 %v3356_v22  ;;  %v3467_v7 = vunpack.c.l.bf16 %v3362_v24 }
  0x1c   : > { %2722 = vmatprep.subr.bf16.mxu0 %v3068_v5  ;;  %2840 = vperm.xlu1 %2833, %v2839_v45   ;;  %4718 = vst [vmem:[#allocation14_spill] sm:$0xff] %v3422_v52  ;;  %4719 = vst [vmem:[#allocation15_spill] sm:$0xff] %v3424_v53  ;;  %v2859_v3 = vpack.i.bf16 %v3444_v62, %v3441_v61 }
  0x1d   : > { %2769 = vmatpush3.bf16.msra.mxu1 %v3091_v11  ;;  %4720 = vst [vmem:[#allocation16_spill] sm:$0xff] %v3428_v55  ;;  %4721 = vst [vmem:[#allocation17_spill] sm:$0xff] %v3430_v56  ;;  %v2864_v6 = vpack.i.bf16 %v3454_v2, %v3451_v1  ;;  %v3478_v11 = vunpack.c.h.bf16 %v3367_v26 }
  0x1e   : > { %2770 = vmatprep.subr.bf16.mxu1 %v3092_v13  ;;  %4722 = vst [vmem:[#allocation18_spill] sm:$0xff] %v3434_v58  ;;  %4723 = vst [vmem:[#allocation19_spill] sm:$0xff] %v3436_v59 }
  0x1f   : > { %2723 = vmatpush3.bf16.msra.mxu0 %v3068_v5  ;;  %2885 = vperm.xlu0 %2827, %v2884_v54   ;;  %4724 = vst [vmem:[#allocation20_spill] sm:$0xff] %v3441_v61  ;;  %4725 = vst [vmem:[#allocation21_spill] sm:$0xff] %v3444_v62  ;;  %v3462_v5 = vunpack.c.h.bf16 %v3356_v22 }
  0x20   : > { %2724 = vmatprep.subr.bf16.mxu0 %v3069_v8  ;;  %2845 = vperm.xlu1 %2833, %v2844_v51   ;;  %4726 = vst [vmem:[#allocation22_spill] sm:$0xff] %v3451_v1  ;;  %4727 = vst [vmem:[#allocation23_spill] sm:$0xff] %v3454_v2 }
  0x21   : > { %2771 = vmatpush3.bf16.msra.mxu1 %v3092_v13  ;;  %4728 = vst [vmem:[#allocation24_spill] sm:$0xff] %v3459_v4  ;;  %4729 = vst [vmem:[#allocation25_spill] sm:$0xff] %v3462_v5  ;;  %v2869_v9 = vpack.i.bf16 %v3462_v5, %v3459_v4  ;;  %v3483_v13 = vunpack.c.l.bf16 %v3372_v28  ;;  %v1216_v4 = vlaneseq }
  0x22   : > { %2772 = vmatprep.subr.bf16.mxu1 %v3093_v16  ;;  %4730 = vst [vmem:[#allocation26_spill] sm:$0xff] %v3467_v7  ;;  %4733 = vst [vmem:[#allocation29_spill] sm:$0xff] %v3478_v11 }
  0x23   : > { %2725 = vmatpush3.bf16.msra.mxu0 %v3069_v8  ;;  %2895 = vperm.xlu0 %2827, %v2894_v60   ;;  %v3470_v8 = vunpack.c.h.bf16 %v3362_v24  ;;  %4734 = vst [vmem:[#allocation30_spill] sm:$0xff] %v3483_v13  ;;  %v3688_v62 = vand.u32 127, %v1216_v4 }
  0x24   : > { %2726 = vmatprep.subr.bf16.mxu0 %v3070_v10  ;;  %2850 = vperm.xlu1 %2833, %v2849_v57  }
  0x25   : > { %2773 = vmatpush3.bf16.msra.mxu1 %v3093_v16  ;;  %4731 = vst [vmem:[#allocation27_spill] sm:$0xff] %v3470_v8  ;;  %4736 = vst [vmem:[#allocation32_spill] sm:$0xff] %v3688_v62  ;;  %v3693_v50 = vcvt.s32.f32 %v3688_v62 }
  0x26   : > { %2774 = vmatprep.subr.bf16.mxu1 %v3094_v30 }
  0x27   : > { %2727 = vmatpush3.bf16.msra.mxu0 %v3070_v10  ;;  %2905 = vperm.xlu0 %2827, %v2904_v0   ;;  %v3475_v10 = vunpack.c.l.bf16 %v3367_v26 }
  0x28   : > { %2728 = vmatprep.subr.bf16.mxu0 %v3071_v12  ;;  %2855 = vperm.xlu1 %2833, %v2854_v63  }
  0x29   : > { %2775 = vmatpush3.bf16.msra.mxu1 %v3094_v30  ;;  %4732 = vst [vmem:[#allocation28_spill] sm:$0xff] %v3475_v10 }
  0x2a   : > { %2776 = vmatprep.subr.bf16.mxu1 %v3095_v31 }
  0x2b   : > { %2729 = vmatpush3.bf16.msra.mxu0 %v3071_v12  ;;  %v2879_v12 = vpack.i.bf16 %v3470_v8, %v3467_v7 }
  0x2c   : > { %2860 = vperm.xlu1 %2833, %v2859_v3  }
  0x2d   : > { %2777 = vmatpush3.bf16.msra.mxu1 %v3095_v31 }
  0x2e   : > { %2731 = vmatmul.mubr.bf16.vlgmr.msra.gmra.mrb[0].mxu0 %v226_v14  ;;  %v3486_v14 = vunpack.c.h.bf16 %v3372_v28 }
  0x2f   : > { %2734 = vmatprep.mubr.bf16.mxu0 %v228_v15  ;;  %v2889_v15 = vpack.i.bf16 %v3478_v11, %v3475_v10 }
  0x30   : > { %2865 = vperm.xlu1 %2833, %v2864_v6   ;;  %4735 = vst [vmem:[#allocation31_spill] sm:$0xff] %v3486_v14  ;;  %v2899_v16 = vpack.i.bf16 %v3486_v14, %v3483_v13 }
  0x34   : > { %2870 = vperm.xlu1 %2833, %v2869_v9  }
  0x36   : > { %2735 = vmatmul.mubr.bf16.gmra.mrb[4].mxu0 %v230_v17  ;;  %v3495_v17 = vld [vmem:[%s4640_s2] ss:$0 sm:$0xff] }
  0x37   : > { %2738 = vmatprep.mubr.bf16.mxu0 %v232_v18 }
  0x38   : > { %2880 = vperm.xlu1 %2833, %v2879_v12  }
  0x3c   : > { %2890 = vperm.xlu1 %2833, %v2889_v15  }
  0x3e   : > { %2739 = vmatmul.mubr.bf16.gmra.mrb[8].mxu0 %v234_v19 }
  0x3f   : > { %2742 = vmatprep.mubr.bf16.mxu0 %v3349_v20 }
  0x40   : > { %2900 = vperm.xlu1 %2833, %v2899_v16  }
  0x46   : > { %2743 = vmatmul.mubr.bf16.gmra.mrb[12].mxu0 %v3353_v21 }
  0x47   : > { %2746 = vmatprep.mubr.bf16.mxu0 %v3356_v22 }
  0x4e   : > { %2747 = vmatmul.mubr.bf16.gmra.mrb[16].mxu0 %v242_v23 }
  0x4f   : > { %2750 = vmatprep.mubr.bf16.mxu0 %v3362_v24 }
  0x56   : > { %2751 = vmatmul.mubr.bf16.gmra.mrb[20].mxu0 %v246_v25 }
  0x57   : > { %2754 = vmatprep.mubr.bf16.mxu0 %v3367_v26 }
  0x5e   : > { %2755 = vmatmul.mubr.bf16.gmra.mrb[24].mxu0 %v250_v27 }
  0x5f   : > { %2758 = vmatprep.mubr.bf16.mxu0 %v3372_v28 }
  0x66   : > { %2759 = vmatmul.mubr.bf16.gmra.mrb[28].mxu0 %v254_v29 }
  0x96   : > { %v2830_v47 = vpop.permute.xlu0 %2829 }
  0x97   : > { %v2831_v61 = vunpack.i.l.bf16 %v2830_v47 }
  0x99   : > { %vm1379_vm1 = vcmp.eq.f32.partialorder %v3693_v50, %v2831_v61 }
 0x101   : > { %v2732_v18 = vpop.f32.mrb[0].mxu0 }
 0x102   : > { %v466_v19 = vadd.f32 %v2732_v18, %v3495_v17  ;;  %v457_v20 = vpop.f32.mrb[1].mxu0 }
 0x103   : > { %v458_v21 = vadd.f32 %v3495_v17, %v457_v20  ;;  %v2733_v22 = vpop.f32.mrb[2].mxu0 }
 0x104   : > { %v469_v23 = vadd.f32 %v2733_v22, %v3495_v17  ;;  %v460_v24 = vpop.f32.mrb[3].mxu0  ;;  %v586_v26 = vmax.f32 %v466_v19, 0.0 }
 0x105   : > { %v461_v25 = vadd.f32 %v3495_v17, %v460_v24  ;;  %v584_v28 = vmax.f32 %v458_v21, 0.0 }
 0x106   : > { %v587_v27 = vmax.f32 %v469_v23, 0.0 }
 0x107   : > { %v585_v29 = vmax.f32 %v461_v25, 0.0 }
 0x108   : > { %v617_v30 = vpack.c.bf16 %v587_v27, %v586_v26 }
 0x109   : > { %v2736_v31 = vpop.f32.mrb[4].mxu0  ;;  %v616_v40 = vpack.c.bf16 %v585_v29, %v584_v28 }
 0x10a   : > { %v482_v41 = vadd.f32 %v2736_v31, %v3495_v17  ;;  %v473_v42 = vpop.f32.mrb[5].mxu0 }
 0x10b   : > { %v474_v45 = vadd.f32 %v3495_v17, %v473_v42  ;;  %v2737_v48 = vpop.f32.mrb[6].mxu0  ;;  %2778 = vmatprep.mubr.bf16.mxu1 %v616_v40 }
 0x10c   : > { %v590_v51 = vmax.f32 %v482_v41, 0.0  ;;  %v485_v54 = vadd.f32 %v2737_v48, %v3495_v17  ;;  %v476_v57 = vpop.f32.mrb[7].mxu0  ;;  %2779 = vmatmul.mubr.bf16.vlgmr.msra.gmra.mrb[0].mxu1 %v617_v30 }
 0x10d   : > { %v588_v60 = vmax.f32 %v474_v45, 0.0  ;;  %v477_v63 = vadd.f32 %v3495_v17, %v476_v57 }
 0x10e   : > { %v591_v0 = vmax.f32 %v485_v54, 0.0 }
 0x10f   : > { %v589_v3 = vmax.f32 %v477_v63, 0.0 }
 0x110   : > { %v619_v6 = vpack.c.bf16 %v591_v0, %v590_v51 }
 0x111   : > { %v618_v9 = vpack.c.bf16 %v589_v3, %v588_v60  ;;  %v2740_v12 = vpop.f32.mrb[8].mxu0 }
 0x112   : > { %v498_v15 = vadd.f32 %v2740_v12, %v3495_v17  ;;  %v489_v16 = vpop.f32.mrb[9].mxu0 }
 0x113   : > { %v490_v18 = vadd.f32 %v3495_v17, %v489_v16  ;;  %v2741_v19 = vpop.f32.mrb[10].mxu0  ;;  %2782 = vmatprep.mubr.bf16.mxu1 %v618_v9 }
 0x114   : > { %v594_v20 = vmax.f32 %v498_v15, 0.0  ;;  %v501_v21 = vadd.f32 %v2741_v19, %v3495_v17  ;;  %v492_v22 = vpop.f32.mrb[11].mxu0  ;;  %2783 = vmatmul.mubr.bf16.gmra.mrb[4].mxu1 %v619_v6 }
 0x115   : > { %v592_v23 = vmax.f32 %v490_v18, 0.0  ;;  %v493_v24 = vadd.f32 %v3495_v17, %v492_v22 }
 0x116   : > { %v595_v25 = vmax.f32 %v501_v21, 0.0 }
 0x117   : > { %v593_v26 = vmax.f32 %v493_v24, 0.0 }
 0x118   : > { %v621_v27 = vpack.c.bf16 %v595_v25, %v594_v20 }
 0x119   : > { %v620_v28 = vpack.c.bf16 %v593_v26, %v592_v23  ;;  %v2744_v29 = vpop.f32.mrb[12].mxu0 }
 0x11a   : > { %v514_v30 = vadd.f32 %v2744_v29, %v3495_v17  ;;  %v505_v31 = vpop.f32.mrb[13].mxu0 }
 0x11b   : > { %v506_v40 = vadd.f32 %v3495_v17, %v505_v31  ;;  %v2745_v41 = vpop.f32.mrb[14].mxu0  ;;  %2786 = vmatprep.mubr.bf16.mxu1 %v620_v28 }
 0x11c   : > { %v598_v42 = vmax.f32 %v514_v30, 0.0  ;;  %v517_v45 = vadd.f32 %v2745_v41, %v3495_v17  ;;  %v508_v48 = vpop.f32.mrb[15].mxu0  ;;  %2787 = vmatmul.mubr.bf16.gmra.mrb[8].mxu1 %v621_v27 }
 0x11d   : > { %v596_v51 = vmax.f32 %v506_v40, 0.0  ;;  %v509_v54 = vadd.f32 %v3495_v17, %v508_v48 }
 0x11e   : > { %v599_v57 = vmax.f32 %v517_v45, 0.0 }
 0x11f   : > { %v597_v60 = vmax.f32 %v509_v54, 0.0 }
 0x120   : > { %v623_v63 = vpack.c.bf16 %v599_v57, %v598_v42 }
 0x121   : > { %v622_v0 = vpack.c.bf16 %v597_v60, %v596_v51  ;;  %v2748_v3 = vpop.f32.mrb[16].mxu0 }
 0x122   : > { %v530_v6 = vadd.f32 %v2748_v3, %v3495_v17  ;;  %v521_v9 = vpop.f32.mrb[17].mxu0 }
 0x123   : > { %v522_v12 = vadd.f32 %v3495_v17, %v521_v9  ;;  %v2749_v15 = vpop.f32.mrb[18].mxu0  ;;  %2790 = vmatprep.mubr.bf16.mxu1 %v622_v0 }
 0x124   : > { %v602_v16 = vmax.f32 %v530_v6, 0.0  ;;  %v533_v18 = vadd.f32 %v2749_v15, %v3495_v17  ;;  %v524_v19 = vpop.f32.mrb[19].mxu0  ;;  %2791 = vmatmul.mubr.bf16.gmra.mrb[12].mxu1 %v623_v63 }
 0x125   : > { %v600_v20 = vmax.f32 %v522_v12, 0.0  ;;  %v525_v21 = vadd.f32 %v3495_v17, %v524_v19 }
 0x126   : > { %v603_v22 = vmax.f32 %v533_v18, 0.0 }
 0x127   : > { %v601_v23 = vmax.f32 %v525_v21, 0.0 }
 0x128   : > { %v625_v24 = vpack.c.bf16 %v603_v22, %v602_v16 }
 0x129   : > { %v624_v25 = vpack.c.bf16 %v601_v23, %v600_v20  ;;  %v2752_v26 = vpop.f32.mrb[20].mxu0 }
 0x12a   : > { %v546_v27 = vadd.f32 %v2752_v26, %v3495_v17  ;;  %v537_v28 = vpop.f32.mrb[21].mxu0 }
 0x12b   : > { %v538_v29 = vadd.f32 %v3495_v17, %v537_v28  ;;  %v2753_v30 = vpop.f32.mrb[22].mxu0  ;;  %2794 = vmatprep.mubr.bf16.mxu1 %v624_v25 }
 0x12c   : > { %v606_v31 = vmax.f32 %v546_v27, 0.0  ;;  %v549_v40 = vadd.f32 %v2753_v30, %v3495_v17  ;;  %v540_v41 = vpop.f32.mrb[23].mxu0  ;;  %2795 = vmatmul.mubr.bf16.gmra.mrb[16].mxu1 %v625_v24 }
 0x12d   : > { %v604_v42 = vmax.f32 %v538_v29, 0.0  ;;  %v541_v45 = vadd.f32 %v3495_v17, %v540_v41 }
 0x12e   : > { %v607_v48 = vmax.f32 %v549_v40, 0.0 }
 0x12f   : > { %v605_v51 = vmax.f32 %v541_v45, 0.0 }
 0x130   : > { %v627_v54 = vpack.c.bf16 %v607_v48, %v606_v31 }
 0x131   : > { %v626_v57 = vpack.c.bf16 %v605_v51, %v604_v42  ;;  %v2756_v60 = vpop.f32.mrb[24].mxu0  ;;  %v3532_v51 = vld [vmem:[%s4642_s4] ss:$0 sm:$0xff] }
 0x132   : > { %v562_v63 = vadd.f32 %v2756_v60, %v3495_v17  ;;  %v553_v0 = vpop.f32.mrb[25].mxu0 }
 0x133   : > { %v554_v3 = vadd.f32 %v3495_v17, %v553_v0  ;;  %v2757_v6 = vpop.f32.mrb[26].mxu0  ;;  %2798 = vmatprep.mubr.bf16.mxu1 %v626_v57 }
 0x134   : > { %v610_v9 = vmax.f32 %v562_v63, 0.0  ;;  %v565_v12 = vadd.f32 %v2757_v6, %v3495_v17  ;;  %v556_v15 = vpop.f32.mrb[27].mxu0  ;;  %2799 = vmatmul.mubr.bf16.gmra.mrb[20].mxu1 %v627_v54 }
 0x135   : > { %v608_v16 = vmax.f32 %v554_v3, 0.0  ;;  %v557_v18 = vadd.f32 %v3495_v17, %v556_v15 }
 0x136   : > { %v611_v19 = vmax.f32 %v565_v12, 0.0 }
 0x137   : > { %v609_v20 = vmax.f32 %v557_v18, 0.0 }
 0x138   : > { %v629_v21 = vpack.c.bf16 %v611_v19, %v610_v9 }
 0x139   : > { %v628_v22 = vpack.c.bf16 %v609_v20, %v608_v16  ;;  %v2760_v23 = vpop.f32.mrb[28].mxu0 }
 0x13a   : > { %v578_v24 = vadd.f32 %v2760_v23, %v3495_v17  ;;  %v569_v25 = vpop.f32.mrb[29].mxu0 }
 0x13b   : > { %v570_v26 = vadd.f32 %v3495_v17, %v569_v25  ;;  %v2761_v27 = vpop.f32.mrb[30].mxu0  ;;  %2802 = vmatprep.mubr.bf16.mxu1 %v628_v22 }
 0x13c   : > { %v614_v28 = vmax.f32 %v578_v24, 0.0  ;;  %v581_v29 = vadd.f32 %v2761_v27, %v3495_v17  ;;  %v572_v30 = vpop.f32.mrb[31].mxu0  ;;  %2803 = vmatmul.mubr.bf16.gmra.mrb[24].mxu1 %v629_v21 }
 0x13d   : > { %v612_v31 = vmax.f32 %v570_v26, 0.0  ;;  %v573_v40 = vadd.f32 %v3495_v17, %v572_v30 }
 0x13e   : > { %v615_v41 = vmax.f32 %v581_v29, 0.0 }
 0x13f   : > { %v613_v42 = vmax.f32 %v573_v40, 0.0 }
 0x140   : > { %v631_v45 = vpack.c.bf16 %v615_v41, %v614_v28 }
 0x141   : > { %v630_v48 = vpack.c.bf16 %v613_v42, %v612_v31 }
 0x143   : > { %2806 = vmatprep.mubr.bf16.mxu1 %v630_v48 }
 0x144   : > { %2807 = vmatmul.mubr.bf16.gmra.mrb[28].mxu1 %v631_v45 }
 0x1df   : > { %v2780_v54 = vpop.f32.mrb[0].mxu1 }
 0x1e0   : > { %v3535_v57 = vadd.f32 %v2780_v54, %v3532_v51  ;;  %v737_v60 = vpop.f32.mrb[1].mxu1 }
 0x1e1   : > { %v3538_v63 = vadd.f32 %v3532_v51, %v737_v60  ;;  %v2781_v17 = vpop.f32.mrb[2].mxu1 }
 0x1e2   : > { %868 = vmax.xlane.f32.xlu1 %v3535_v57  ;;  %v740_v0 = vpop.f32.mrb[3].mxu1  ;;  %v3543_v3 = vadd.f32 %v2781_v17, %v3532_v51 }
 0x1e3   : > { %864 = vmax.xlane.f32.xlu0 %v3538_v63  ;;  %v3546_v6 = vadd.f32 %v3532_v51, %v740_v0 }
 0x1e6   : > { %870 = vmax.xlane.f32.xlu1 %v3543_v3 }
 0x1e7   : > { %v2784_v9 = vpop.f32.mrb[4].mxu1  ;;  %866 = vmax.xlane.f32.xlu0 %v3546_v6 }
 0x1e8   : > { %v3551_v12 = vadd.f32 %v2784_v9, %v3532_v51  ;;  %v753_v15 = vpop.f32.mrb[5].mxu1 }
 0x1e9   : > { %v2785_v16 = vpop.f32.mrb[6].mxu1  ;;  %v3557_v20 = vadd.f32 %v3532_v51, %v753_v15 }
 0x1ea   : > { %v3554_v18 = vadd.f32 %v2785_v16, %v3532_v51  ;;  %v756_v19 = vpop.f32.mrb[7].mxu1 }
 0x1eb   : > { %876 = vmax.xlane.f32.xlu0 %v3551_v12  ;;  %v3562_v21 = vadd.f32 %v3532_v51, %v756_v19 }
 0x1ec   : > { %878 = vmax.xlane.f32.xlu1 %v3554_v18 }
 0x1ef   : > { %v2788_v22 = vpop.f32.mrb[8].mxu1  ;;  %872 = vmax.xlane.f32.xlu0 %v3557_v20 }
 0x1f0   : > { %v3566_v23 = vadd.f32 %v2788_v22, %v3532_v51  ;;  %v769_v24 = vpop.f32.mrb[9].mxu1  ;;  %874 = vmax.xlane.f32.xlu1 %v3562_v21 }
 0x1f1   : > { %v2789_v25 = vpop.f32.mrb[10].mxu1  ;;  %v3573_v28 = vadd.f32 %v3532_v51, %v769_v24 }
 0x1f2   : > { %v3570_v26 = vadd.f32 %v2789_v25, %v3532_v51  ;;  %v772_v27 = vpop.f32.mrb[11].mxu1 }
 0x1f3   : > { %884 = vmax.xlane.f32.xlu0 %v3566_v23  ;;  %v3578_v29 = vadd.f32 %v3532_v51, %v772_v27 }
 0x1f4   : > { %886 = vmax.xlane.f32.xlu1 %v3570_v26 }
 0x1f7   : > { %v2792_v30 = vpop.f32.mrb[12].mxu1  ;;  %880 = vmax.xlane.f32.xlu0 %v3573_v28 }
 0x1f8   : > { %v3582_v31 = vadd.f32 %v2792_v30, %v3532_v51  ;;  %v785_v40 = vpop.f32.mrb[13].mxu1  ;;  %882 = vmax.xlane.f32.xlu1 %v3578_v29 }
 0x1f9   : > { %v2793_v41 = vpop.f32.mrb[14].mxu1  ;;  %v3589_v48 = vadd.f32 %v3532_v51, %v785_v40 }
 0x1fa   : > { %v3586_v42 = vadd.f32 %v2793_v41, %v3532_v51  ;;  %v788_v45 = vpop.f32.mrb[15].mxu1 }
 0x1fb   : > { %892 = vmax.xlane.f32.xlu0 %v3582_v31  ;;  %v3594_v54 = vadd.f32 %v3532_v51, %v788_v45 }
 0x1fc   : > { %894 = vmax.xlane.f32.xlu1 %v3586_v42 }
 0x1ff   : > { %v2796_v60 = vpop.f32.mrb[16].mxu1  ;;  %888 = vmax.xlane.f32.xlu0 %v3589_v48 }
 0x200   : > { %v3598_v17 = vadd.f32 %v2796_v60, %v3532_v51  ;;  %v801_v0 = vpop.f32.mrb[17].mxu1  ;;  %890 = vmax.xlane.f32.xlu1 %v3594_v54 }
 0x201   : > { %v2797_v9 = vpop.f32.mrb[18].mxu1  ;;  %v3605_v19 = vadd.f32 %v3532_v51, %v801_v0 }
 0x202   : > { %v3602_v15 = vadd.f32 %v2797_v9, %v3532_v51  ;;  %v804_v16 = vpop.f32.mrb[19].mxu1 }
 0x203   : > { %900 = vmax.xlane.f32.xlu0 %v3598_v17  ;;  %v3610_v22 = vadd.f32 %v3532_v51, %v804_v16 }
 0x204   : > { %902 = vmax.xlane.f32.xlu1 %v3602_v15 }
 0x207   : > { %v2800_v24 = vpop.f32.mrb[20].mxu1  ;;  %896 = vmax.xlane.f32.xlu0 %v3605_v19 }
 0x208   : > { %v3614_v25 = vadd.f32 %v2800_v24, %v3532_v51  ;;  %v817_v27 = vpop.f32.mrb[21].mxu1  ;;  %898 = vmax.xlane.f32.xlu1 %v3610_v22 }
 0x209   : > { %v2801_v30 = vpop.f32.mrb[22].mxu1  ;;  %v3621_v45 = vadd.f32 %v3532_v51, %v817_v27 }
 0x20a   : > { %v3618_v40 = vadd.f32 %v2801_v30, %v3532_v51  ;;  %v820_v41 = vpop.f32.mrb[23].mxu1 }
 0x20b   : > { %908 = vmax.xlane.f32.xlu0 %v3614_v25  ;;  %v3626_v60 = vadd.f32 %v3532_v51, %v820_v41 }
 0x20c   : > { %910 = vmax.xlane.f32.xlu1 %v3618_v40 }
 0x20f   : > { %v2804_v0 = vpop.f32.mrb[24].mxu1  ;;  %904 = vmax.xlane.f32.xlu0 %v3621_v45 }
 0x210   : > { %v3630_v9 = vadd.f32 %v2804_v0, %v3532_v51  ;;  %v833_v16 = vpop.f32.mrb[25].mxu1  ;;  %906 = vmax.xlane.f32.xlu1 %v3626_v60 }
 0x211   : > { %v2805_v24 = vpop.f32.mrb[26].mxu1  ;;  %v3637_v59 = vadd.f32 %v3532_v51, %v833_v16 }
 0x212   : > { %v3634_v27 = vadd.f32 %v2805_v24, %v3532_v51  ;;  %v836_v30 = vpop.f32.mrb[27].mxu1 }
 0x213   : > { %916 = vmax.xlane.f32.xlu0 %v3630_v9  ;;  %v3642_v41 = vadd.f32 %v3532_v51, %v836_v30 }
 0x214   : > { %918 = vmax.xlane.f32.xlu1 %v3634_v27 }
 0x217   : > { %v2808_v0 = vpop.f32.mrb[28].mxu1  ;;  %912 = vmax.xlane.f32.xlu0 %v3637_v59 }
 0x218   : > { %v3646_v14 = vadd.f32 %v2808_v0, %v3532_v51  ;;  %v849_v13 = vpop.f32.mrb[29].mxu1  ;;  %914 = vmax.xlane.f32.xlu1 %v3642_v41  ;;  %v2836_v0 = vpop.permute.xlu1 %2835 }
 0x219   : > { %v2809_v24 = vpop.f32.mrb[30].mxu1  ;;  %v3653_v11 = vadd.f32 %v3532_v51, %v849_v13  ;;  %v2837_v49 = vunpack.i.l.bf16 %v2836_v0  ;;  %v2838_v33 = vunpack.i.h.bf16 %v2836_v0 }
 0x21a   : > { %v3650_v16 = vadd.f32 %v2809_v24, %v3532_v51  ;;  %v852_v58 = vpop.f32.mrb[31].mxu1 }
 0x21b   : > { %924 = vmax.xlane.f32.xlu0 %v3646_v14  ;;  %v3658_v30 = vadd.f32 %v3532_v51, %v852_v58  ;;  %v3676_v51 = vpop.permute.xlu0 %2875  ;;  %vm1381_vm2 = vcmp.eq.f32.partialorder %v3693_v50, %v2837_v49  ;;  %vm1382_vm5 = vcmp.eq.f32.partialorder %v3693_v50, %v2838_v33 }
 0x21c   : > { %926 = vmax.xlane.f32.xlu1 %v3650_v16  ;;  %v3662_v53 = vpop.permute.xlu1 %2840 }
 0x21f   : > { %920 = vmax.xlane.f32.xlu0 %v3653_v11  ;;  %v3680_v46 = vpop.permute.xlu0 %2885 }
 0x220   : > { %922 = vmax.xlane.f32.xlu1 %v3658_v30  ;;  %v3664_v24 = vpop.permute.xlu1 %2845 }
 0x223   : > { %v3684_v39 = vpop.permute.xlu0 %2895 }
 0x224   : > { %v3666_v10 = vpop.permute.xlu1 %2850 }
 0x227   : > { %v3690_v2 = vpop.permute.xlu0 %2905 }
 0x228   : > { %v3668_v13 = vpop.permute.xlu1 %2855 }
 0x22c   : > { %v3670_v52 = vpop.permute.xlu1 %2860 }
 0x230   : > { %v3672_v8 = vpop.permute.xlu1 %2865 }
 0x234   : > { %v3674_v58 = vpop.permute.xlu1 %2870 }
 0x238   : > { %v3678_v7 = vpop.permute.xlu1 %2880 }
 0x23c   : > { %v3682_v5 = vpop.permute.xlu1 %2890 }
 0x240   : > { %v3686_v38 = vpop.permute.xlu1 %2900 }
 0x26f   : > { %v869_v1 = vpop.xlane.xlu1 %868 }
 0x270   : > { %v865_v56 = vpop.xlane.xlu0 %864  ;;  %vm1774_vm0 = vcmp.eq.f32.partialorder %v3535_v57, %v869_v1  ;;  %v930_v44 = vsub.f32 %v3535_v57, %v869_v1 }
 0x271   : > { %v1806_v55 = vsel %vm1774_vm0, %v3693_v50, 128.0  ;;  %v928_v35 = vsub.f32 %v3538_v63, %v865_v56  ;;  %vm1772_vm4 = vcmp.eq.f32.partialorder %v3538_v63, %v865_v56 }
 0x272   : > { %1840 = vmin.xlane.f32.xlu0 %v1806_v55  ;;  %v1413_v43 = vsel %vm1381_vm2, %v930_v44, 0.0  ;;  %v2832_v55 = vunpack.i.h.bf16 %v2830_v47  ;;  %v1804_v61 = vsel %vm1772_vm4, %v3693_v50, 128.0  ;;  %v2847_v47 = vunpack.i.l.bf16 %v3664_v24 }
 0x273   : > { %v871_v4 = vpop.xlane.xlu1 %870  ;;  %v1411_v34 = vsel %vm1379_vm1, %v928_v35, 0.0 }
 0x274   : > { %1443 = vadd.xlane.f32.xlu1 %v1411_v34  ;;  %vm1775_vm3 = vcmp.eq.f32.partialorder %v3543_v3, %v871_v4  ;;  %v867_v62 = vpop.xlane.xlu0 %866  ;;  %v931_v1 = vsub.f32 %v3543_v3, %v871_v4  ;;  %vm1380_vm6 = vcmp.eq.f32.partialorder %v3693_v50, %v2832_v55  ;;  %v2848_v3 = vunpack.i.h.bf16 %v3664_v24 }
 0x275   : > { %v1807_v37 = vsel %vm1775_vm3, %v3693_v50, 128.0  ;;  %v929_v34 = vsub.f32 %v3546_v6, %v867_v62  ;;  %vm1773_vm7 = vcmp.eq.f32.partialorder %v3546_v6, %v867_v62  ;;  %v964_v62 = vmul.f32 1.442695, %v930_v44 }
 0x276   : > { %1447 = vadd.xlane.f32.xlu0 %v1413_v43  ;;  %v1414_v57 = vsel %vm1382_vm5, %v931_v1, 0.0  ;;  %vm1385_vm10 = vcmp.eq.f32.partialorder %v3693_v50, %v2847_v47  ;;  %v966_v55 = vmul.f32 1.442695, %v931_v1  ;;  %vm1386_vm11 = vcmp.eq.f32.partialorder %v3693_v50, %v2848_v3 }
 0x277   : > { %v1412_v56 = vsel %vm1380_vm6, %v929_v34, 0.0  ;;  %3112 = vpow2.f32 %v964_v62  ;;  %v2842_v44 = vunpack.i.l.bf16 %v3662_v53  ;;  %v2857_v62 = vunpack.i.l.bf16 %v3668_v13 }
 0x278   : > { %1842 = vmin.xlane.f32.xlu1 %v1807_v37  ;;  %v877_v49 = vpop.xlane.xlu0 %876  ;;  %v1805_v37 = vsel %vm1773_vm7, %v3693_v50, 128.0  ;;  %3114 = vpow2.f32 %v966_v55  ;;  %v2858_v55 = vunpack.i.h.bf16 %v3668_v13 }
 0x279   : > { %v879_v43 = vpop.xlane.xlu1 %878  ;;  %vm1778_vm8 = vcmp.eq.f32.partialorder %v3551_v12, %v877_v49  ;;  %v934_v63 = vsub.f32 %v3551_v12, %v877_v49  ;;  %v960_v12 = vmul.f32 1.442695, %v928_v35  ;;  %vm1383_vm14 = vcmp.eq.f32.partialorder %v3693_v50, %v2842_v44 }
 0x27a   : > { %1836 = vmin.xlane.f32.xlu0 %v1804_v61  ;;  %vm1779_vm9 = vcmp.eq.f32.partialorder %v3554_v18, %v879_v43  ;;  %v1810_v33 = vsel %vm1778_vm8, %v3693_v50, 128.0  ;;  %v935_v4 = vsub.f32 %v3554_v18, %v879_v43  ;;  %v962_v18 = vmul.f32 1.442695, %v929_v34 }
 0x27b   : > { %v1811_v0 = vsel %vm1779_vm9, %v3693_v50, 128.0  ;;  %v2843_v43 = vunpack.i.h.bf16 %v3662_v53  ;;  %3116 = vpow2.f32 %v960_v12  ;;  %vm1389_vm2 = vcmp.eq.f32.partialorder %v3693_v50, %v2857_v62 }
 0x27c   : > { %1449 = vadd.xlane.f32.xlu1 %v1414_v57  ;;  %v873_v6 = vpop.xlane.xlu0 %872  ;;  %v1417_v57 = vsel %vm1385_vm10, %v934_v63, 0.0  ;;  %v1418_v24 = vsel %vm1386_vm11, %v935_v4, 0.0  ;;  %3118 = vpow2.f32 %v962_v18  ;;  %v974_v18 = vmul.f32 1.442695, %v935_v4 }
 0x27d   : > { %v875_v61 = vpop.xlane.xlu1 %874  ;;  %vm1776_vm12 = vcmp.eq.f32.partialorder %v3557_v20, %v873_v6  ;;  %v932_v1 = vsub.f32 %v3557_v20, %v873_v6  ;;  %vm1384_vm15 = vcmp.eq.f32.partialorder %v3693_v50, %v2843_v43  ;;  %vm1390_vm3 = vcmp.eq.f32.partialorder %v3693_v50, %v2858_v55 }
 0x27e   : > { %1445 = vadd.xlane.f32.xlu0 %v1412_v56  ;;  %vm1777_vm13 = vcmp.eq.f32.partialorder %v3562_v21, %v875_v61  ;;  %v1808_v49 = vsel %vm1776_vm12, %v3693_v50, 128.0  ;;  %v933_v35 = vsub.f32 %v3562_v21, %v875_v61  ;;  %v2868_v62 = vunpack.i.h.bf16 %v3672_v8 }
 0x27f   : > { %v1809_v56 = vsel %vm1777_vm13, %v3693_v50, 128.0 }
 0x280   : > { %1838 = vmin.xlane.f32.xlu1 %v1805_v37  ;;  %v1415_v37 = vsel %vm1383_vm14, %v932_v1, 0.0  ;;  %v1416_v34 = vsel %vm1384_vm15, %v933_v35, 0.0  ;;  %vm1394_vm11 = vcmp.eq.f32.partialorder %v3693_v50, %v2868_v62 }
 0x281   : > { %v3113_v47 = vpop.eup %3112  ;;  %v887_v3 = vpop.xlane.xlu1 %886 }
 0x282   : > { %1848 = vmin.xlane.f32.xlu0 %v1810_v33  ;;  %v3115_v20 = vpop.eup %3114  ;;  %v885_v33 = vpop.xlane.xlu0 %884  ;;  %vm1783_vm1 = vcmp.eq.f32.partialorder %v3570_v26, %v887_v3 }
 0x283   : > { %vm1782_vm0 = vcmp.eq.f32.partialorder %v3566_v23, %v885_v33  ;;  %v1815_v12 = vsel %vm1783_vm1, %v3693_v50, 128.0 }
 0x284   : > { %1850 = vmin.xlane.f32.xlu1 %v1811_v0  ;;  %v1814_v6 = vsel %vm1782_vm0, %v3693_v50, 128.0  ;;  %v938_v0 = vsub.f32 %v3566_v23, %v885_v33  ;;  %v968_v23 = vmul.f32 1.442695, %v932_v1 }
 0x285   : > { %v3117_v53 = vpop.eup %3116  ;;  %v883_v44 = vpop.xlane.xlu1 %882 }
 0x286   : > { %1455 = vadd.xlane.f32.xlu0 %v1417_v57  ;;  %v3119_v21 = vpop.eup %3118  ;;  %v881_v61 = vpop.xlane.xlu0 %880  ;;  %v972_v57 = vmul.f32 1.442695, %v934_v63  ;;  %vm1781_vm5 = vcmp.eq.f32.partialorder %v3578_v29, %v883_v44  ;;  %v2852_v63 = vunpack.i.l.bf16 %v3666_v10  ;;  %v937_v1 = vsub.f32 %v3578_v29, %v883_v44 }
 0x287   : > { %vm1780_vm4 = vcmp.eq.f32.partialorder %v3573_v28, %v881_v61  ;;  %v936_v4 = vsub.f32 %v3573_v28, %v881_v61  ;;  %v980_v55 = vmul.f32 1.442695, %v938_v0 }
 0x288   : > { %1457 = vadd.xlane.f32.xlu1 %v1418_v24  ;;  %v939_v24 = vsub.f32 %v3570_v26, %v887_v3  ;;  %3120 = vpow2.f32 %v972_v57  ;;  %v970_v26 = vmul.f32 1.442695, %v933_v35  ;;  %v1812_v43 = vsel %vm1780_vm4, %v3693_v50, 128.0 }
 0x289   : > { %3122 = vpow2.f32 %v974_v18  ;;  %vm1387_vm6 = vcmp.eq.f32.partialorder %v3693_v50, %v2852_v63  ;;  %v895_v33 = vpop.xlane.xlu1 %894 }
 0x28a   : > { %1844 = vmin.xlane.f32.xlu0 %v1808_v49  ;;  %v1421_v49 = vsel %vm1389_vm2, %v938_v0, 0.0  ;;  %v1422_v13 = vsel %vm1390_vm3, %v939_v24, 0.0  ;;  %3124 = vpow2.f32 %v968_v23  ;;  %vm1787_vm9 = vcmp.eq.f32.partialorder %v3586_v42, %v895_v33 }
 0x28b   : > { %3126 = vpow2.f32 %v970_v26  ;;  %v1819_v61 = vsel %vm1787_vm9, %v3693_v50, 128.0  ;;  %v943_v57 = vsub.f32 %v3586_v42, %v895_v33  ;;  %v982_v44 = vmul.f32 1.442695, %v939_v24 }
 0x28c   : > { %1846 = vmin.xlane.f32.xlu1 %v1809_v56  ;;  %v2853_v56 = vunpack.i.h.bf16 %v3666_v10  ;;  %3128 = vpow2.f32 %v980_v55  ;;  %v2862_v0 = vunpack.i.l.bf16 %v3670_v52  ;;  %v978_v42 = vmul.f32 1.442695, %v937_v1 }
 0x28d   : > { %3130 = vpow2.f32 %v982_v44  ;;  %v2863_v23 = vunpack.i.h.bf16 %v3670_v52  ;;  %v2873_v55 = vunpack.i.h.bf16 %v3674_v58 }
 0x28e   : > { %1451 = vadd.xlane.f32.xlu0 %v1415_v37  ;;  %v1813_v37 = vsel %vm1781_vm5, %v3693_v50, 128.0  ;;  %vm1388_vm7 = vcmp.eq.f32.partialorder %v3693_v50, %v2853_v56  ;;  %vm1391_vm14 = vcmp.eq.f32.partialorder %v3693_v50, %v2862_v0  ;;  %v2887_v0 = vunpack.i.l.bf16 %v3680_v46 }
 0x28f   : > { %v1420_v35 = vsel %vm1388_vm7, %v937_v1, 0.0  ;;  %vm1392_vm15 = vcmp.eq.f32.partialorder %v3693_v50, %v2863_v23  ;;  %v2877_v1 = vunpack.i.l.bf16 %v3676_v51  ;;  %vm1396_vm7 = vcmp.eq.f32.partialorder %v3693_v50, %v2873_v55 }
 0x290   : > { %1453 = vadd.xlane.f32.xlu1 %v1416_v34  ;;  %v1419_v34 = vsel %vm1387_vm6, %v936_v4, 0.0 }
 0x291   : > { %vm1397_vm2 = vcmp.eq.f32.partialorder %v3693_v50, %v2877_v1  ;;  %v2883_v1 = vunpack.i.h.bf16 %v3678_v7 }
 0x292   : > { %1028 = vadd.xlane.f32.xlu0 %v3113_v47  ;;  %v3121_v47 = vpop.eup %3120 }
 0x293   : > { %v3123_v28 = vpop.eup %3122 }
 0x294   : > { %1030 = vadd.xlane.f32.xlu1 %v3115_v20  ;;  %v893_v20 = vpop.xlane.xlu0 %892  ;;  %v3125_v10 = vpop.eup %3124 }
 0x295   : > { %vm1786_vm8 = vcmp.eq.f32.partialorder %v3582_v31, %v893_v20  ;;  %v3127_v29 = vpop.eup %3126 }
 0x296   : > { %1024 = vadd.xlane.f32.xlu0 %v3117_v53  ;;  %v2867_v53 = vunpack.i.l.bf16 %v3672_v8  ;;  %v1818_v3 = vsel %vm1786_vm8, %v3693_v50, 128.0  ;;  %v1426_v8 = vsel %vm1394_vm11, %v943_v57, 0.0 }
 0x298   : > { %1026 = vadd.xlane.f32.xlu1 %v3119_v21  ;;  %v942_v21 = vsub.f32 %v3582_v31, %v893_v20  ;;  %vm1393_vm10 = vcmp.eq.f32.partialorder %v3693_v50, %v2867_v53  ;;  %v976_v31 = vmul.f32 1.442695, %v936_v4  ;;  %v3129_v4 = vpop.eup %3128  ;;  %v990_v53 = vmul.f32 1.442695, %v943_v57 }
 0x29a   : > { %1856 = vmin.xlane.f32.xlu0 %v1814_v6  ;;  %v889_v6 = vpop.xlane.xlu0 %888  ;;  %v1425_v18 = vsel %vm1393_vm10, %v942_v21, 0.0  ;;  %3132 = vpow2.f32 %v976_v31  ;;  %vm1401_vm10 = vcmp.eq.f32.partialorder %v3693_v50, %v2887_v0 }
 0x29b   : > { %vm1784_vm12 = vcmp.eq.f32.partialorder %v3589_v48, %v889_v6  ;;  %v940_v24 = vsub.f32 %v3589_v48, %v889_v6  ;;  %3134 = vpow2.f32 %v978_v42  ;;  %v3131_v48 = vpop.eup %3130 }
 0x29c   : > { %1858 = vmin.xlane.f32.xlu1 %v1815_v12  ;;  %v891_v12 = vpop.xlane.xlu1 %890 }
 0x29d   : > { %vm1785_vm13 = vcmp.eq.f32.partialorder %v3594_v54, %v891_v12  ;;  %v941_v63 = vsub.f32 %v3594_v54, %v891_v12  ;;  %v1423_v26 = vsel %vm1391_vm14, %v940_v24, 0.0 }
 0x29e   : > { %1463 = vadd.xlane.f32.xlu0 %v1421_v49  ;;  %v1816_v49 = vsel %vm1784_vm12, %v3693_v50, 128.0  ;;  %v901_v56 = vpop.xlane.xlu0 %900 }
 0x29f   : > { %vm1790_vm0 = vcmp.eq.f32.partialorder %v3598_v17, %v901_v56 }
 0x2a0   : > { %1465 = vadd.xlane.f32.xlu1 %v1422_v13  ;;  %v1817_v13 = vsel %vm1785_vm13, %v3693_v50, 128.0 }
 0x2a2   : > { %1852 = vmin.xlane.f32.xlu0 %v1812_v43  ;;  %v1424_v43 = vsel %vm1392_vm15, %v941_v63, 0.0  ;;  %v897_v20 = vpop.xlane.xlu0 %896  ;;  %vm1400_vm15 = vcmp.eq.f32.partialorder %v3693_v50, %v2883_v1 }
 0x2a3   : > { %vm1788_vm4 = vcmp.eq.f32.partialorder %v3605_v19, %v897_v20  ;;  %v944_v6 = vsub.f32 %v3605_v19, %v897_v20 }
 0x2a4   : > { %1854 = vmin.xlane.f32.xlu1 %v1813_v37  ;;  %v3133_v52 = vpop.eup %3132  ;;  %v903_v37 = vpop.xlane.xlu1 %902  ;;  %v1820_v62 = vsel %vm1788_vm4, %v3693_v50, 128.0 }
 0x2a5   : > { %v3135_v54 = vpop.eup %3134  ;;  %vm1791_vm1 = vcmp.eq.f32.partialorder %v3602_v15, %v903_v37 }
 0x2a6   : > { %1459 = vadd.xlane.f32.xlu0 %v1419_v34  ;;  %v1822_v34 = vsel %vm1790_vm0, %v3693_v50, 128.0  ;;  %v1823_v33 = vsel %vm1791_vm1, %v3693_v50, 128.0 }
 0x2a8   : > { %1461 = vadd.xlane.f32.xlu1 %v1420_v35  ;;  %v946_v35 = vsub.f32 %v3598_v17, %v901_v56  ;;  %v984_v17 = vmul.f32 1.442695, %v940_v24  ;;  %v2888_v24 = vunpack.i.h.bf16 %v3680_v46  ;;  %v992_v46 = vmul.f32 1.442695, %v944_v6 }
 0x2aa   : > { %1036 = vadd.xlane.f32.xlu0 %v3121_v47  ;;  %v2878_v47 = vunpack.i.h.bf16 %v3676_v51  ;;  %vm1402_vm11 = vcmp.eq.f32.partialorder %v3693_v50, %v2888_v24 }
 0x2ac   : > { %1038 = vadd.xlane.f32.xlu1 %v3123_v28  ;;  %v947_v28 = vsub.f32 %v3602_v15, %v903_v37  ;;  %vm1398_vm3 = vcmp.eq.f32.partialorder %v3693_v50, %v2878_v47  ;;  %v2872_v15 = vunpack.i.l.bf16 %v3674_v58  ;;  %v909_v58 = vpop.xlane.xlu0 %908 }
 0x2ad   : > { %vm1794_vm8 = vcmp.eq.f32.partialorder %v3614_v25, %v909_v58  ;;  %v950_v42 = vsub.f32 %v3614_v25, %v909_v58 }
 0x2ae   : > { %1032 = vadd.xlane.f32.xlu0 %v3125_v10  ;;  %v988_v10 = vmul.f32 1.442695, %v942_v21  ;;  %v1430_v51 = vsel %vm1398_vm3, %v947_v28, 0.0  ;;  %v986_v21 = vmul.f32 1.442695, %v941_v63  ;;  %vm1395_vm6 = vcmp.eq.f32.partialorder %v3693_v50, %v2872_v15 }
 0x2af   : > { %v1427_v12 = vsel %vm1395_vm6, %v944_v6, 0.0  ;;  %v996_v63 = vmul.f32 1.442695, %v946_v35 }
 0x2b0   : > { %1034 = vadd.xlane.f32.xlu1 %v3127_v29  ;;  %v899_v29 = vpop.xlane.xlu1 %898  ;;  %3136 = vpow2.f32 %v988_v10 }
 0x2b1   : > { %vm1789_vm5 = vcmp.eq.f32.partialorder %v3610_v22, %v899_v29  ;;  %3138 = vpow2.f32 %v990_v53 }
 0x2b2   : > { %1864 = vmin.xlane.f32.xlu0 %v1818_v3  ;;  %v1429_v3 = vsel %vm1397_vm2, %v946_v35, 0.0  ;;  %3140 = vpow2.f32 %v984_v17  ;;  %v1821_v57 = vsel %vm1789_vm5, %v3693_v50, 128.0  ;;  %v2897_v17 = vunpack.i.l.bf16 %v3684_v39 }
 0x2b3   : > { %3142 = vpow2.f32 %v986_v21  ;;  %v2898_v21 = vunpack.i.h.bf16 %v3684_v39 }
 0x2b4   : > { %1866 = vmin.xlane.f32.xlu1 %v1819_v61  ;;  %v945_v61 = vsub.f32 %v3610_v22, %v899_v29  ;;  %v911_v22 = vpop.xlane.xlu1 %910  ;;  %3144 = vpow2.f32 %v996_v63  ;;  %vm1405_vm2 = vcmp.eq.f32.partialorder %v3693_v50, %v2897_v17 }
 0x2b5   : > { %vm1795_vm9 = vcmp.eq.f32.partialorder %v3618_v40, %v911_v22  ;;  %v951_v23 = vsub.f32 %v3618_v40, %v911_v22  ;;  %v2882_v40 = vunpack.i.l.bf16 %v3678_v7  ;;  %vm1406_vm3 = vcmp.eq.f32.partialorder %v3693_v50, %v2898_v21 }
 0x2b6   : > { %1471 = vadd.xlane.f32.xlu0 %v1425_v18  ;;  %v1428_v44 = vsel %vm1396_vm7, %v945_v61, 0.0  ;;  %v994_v56 = vmul.f32 1.442695, %v945_v61 }
 0x2b7   : > { %v1434_v25 = vsel %vm1402_vm11, %v951_v23, 0.0  ;;  %vm1399_vm14 = vcmp.eq.f32.partialorder %v3693_v50, %v2882_v40 }
 0x2b8   : > { %1473 = vadd.xlane.f32.xlu1 %v1426_v8 }
 0x2ba   : > { %1860 = vmin.xlane.f32.xlu0 %v1816_v49  ;;  %v3137_v18 = vpop.eup %3136  ;;  %v1826_v49 = vsel %vm1794_vm8, %v3693_v50, 128.0 }
 0x2bb   : > { %v3139_v19 = vpop.eup %3138 }
 0x2bc   : > { %1862 = vmin.xlane.f32.xlu1 %v1817_v13  ;;  %v3141_v31 = vpop.eup %3140  ;;  %v905_v13 = vpop.xlane.xlu0 %904 }
 0x2bd   : > { %v3143_v8 = vpop.eup %3142  ;;  %vm1792_vm12 = vcmp.eq.f32.partialorder %v3621_v45, %v905_v13 }
 0x2be   : > { %1467 = vadd.xlane.f32.xlu0 %v1423_v26  ;;  %v1827_v26 = vsel %vm1795_vm9, %v3693_v50, 128.0  ;;  %v3145_v10 = vpop.eup %3144 }
 0x2c0   : > { %1469 = vadd.xlane.f32.xlu1 %v1424_v43  ;;  %v998_v43 = vmul.f32 1.442695, %v947_v28  ;;  %v917_v37 = vpop.xlane.xlu0 %916 }
 0x2c1   : > { %vm1798_vm0 = vcmp.eq.f32.partialorder %v3630_v9, %v917_v37 }
 0x2c2   : > { %1044 = vadd.xlane.f32.xlu0 %v3129_v4  ;;  %v907_v4 = vpop.xlane.xlu1 %906  ;;  %3146 = vpow2.f32 %v998_v43  ;;  %v1830_v15 = vsel %vm1798_vm0, %v3693_v50, 128.0  ;;  %vm1186_vm0 = vcmp.ge.f32.partialorder %v3392_v36, 0.0 }
 0x2c3   : > { %vm1793_vm13 = vcmp.eq.f32.partialorder %v3626_v60, %v907_v4  ;;  %3148 = vpow2.f32 %v992_v46 }
 0x2c4   : > { %1046 = vadd.xlane.f32.xlu1 %v3131_v48  ;;  %v1433_v48 = vsel %vm1401_vm10, %v950_v42, 0.0  ;;  %v1825_v47 = vsel %vm1793_vm13, %v3693_v50, 128.0  ;;  %3150 = vpow2.f32 %v994_v56 }
 0x2c6   : > { %1040 = vadd.xlane.f32.xlu0 %v3133_v52  ;;  %v948_v52 = vsub.f32 %v3621_v45, %v905_v13  ;;  %v919_v35 = vpop.xlane.xlu1 %918  ;;  %v913_v45 = vpop.xlane.xlu0 %912 }
 0x2c7   : > { %vm1799_vm1 = vcmp.eq.f32.partialorder %v3634_v27, %v919_v35  ;;  %v3822_v6 = vsub.f32 %v3634_v27, %v919_v35  ;;  %vm1796_vm4 = vcmp.eq.f32.partialorder %v3637_v59, %v913_v45  ;;  %v952_v58 = vsub.f32 %v3637_v59, %v913_v45 }
 0x2c8   : > { %1042 = vadd.xlane.f32.xlu1 %v3135_v54  ;;  %v1824_v54 = vsel %vm1792_vm12, %v3693_v50, 128.0  ;;  %v1431_v28 = vsel %vm1399_vm14, %v948_v52, 0.0  ;;  %v1831_v61 = vsel %vm1799_vm1, %v3693_v50, 128.0  ;;  %v1000_v39 = vmul.f32 1.442695, %v948_v52 }
 0x2c9   : > { %v1828_v22 = vsel %vm1796_vm4, %v3693_v50, 128.0  ;;  %v1008_v45 = vmul.f32 1.442695, %v952_v58 }
 0x2ca   : > { %1872 = vmin.xlane.f32.xlu0 %v1822_v34  ;;  %v949_v34 = vsub.f32 %v3626_v60, %v907_v4  ;;  %v915_v7 = vpop.xlane.xlu1 %914  ;;  %v3811_v29 = vpop.xlane.xlu0 %924 }
 0x2cb   : > { %vm1797_vm5 = vcmp.eq.f32.partialorder %v3642_v41, %v915_v7  ;;  %v953_v0 = vsub.f32 %v3642_v41, %v915_v7  ;;  %vm1802_vm9 = vcmp.eq.f32.partialorder %v3646_v14, %v3811_v29  ;;  %v958_v40 = vsub.f32 %v3646_v14, %v3811_v29 }
 0x2cc   : > { %1874 = vmin.xlane.f32.xlu1 %v1823_v33  ;;  %v1432_v20 = vsel %vm1400_vm15, %v949_v34, 0.0  ;;  %v3147_v33 = vpop.eup %3146  ;;  %v1834_v1 = vsel %vm1802_vm9, %v3693_v50, 128.0  ;;  %v1014_v14 = vmul.f32 1.442695, %v3822_v6  ;;  %v2908_v7 = vunpack.i.h.bf16 %v3690_v2 }
 0x2cd   : > { %v3149_v60 = vpop.eup %3148  ;;  %v1020_v17 = vmul.f32 1.442695, %v958_v40 }
 0x2ce   : > { %1479 = vadd.xlane.f32.xlu0 %v1429_v3  ;;  %v3151_v53 = vpop.eup %3150  ;;  %v3814_v3 = vpop.xlane.xlu1 %926  ;;  %vm1410_vm14 = vcmp.eq.f32.partialorder %v3693_v50, %v2908_v7 }
 0x2cf   : > { %v3824_v55 = vpop.xlane.xlu0 %920  ;;  %vm1803_vm11 = vcmp.eq.f32.partialorder %v3650_v16, %v3814_v3 }
 0x2d0   : > { %1481 = vadd.xlane.f32.xlu1 %v1430_v51  ;;  %v954_v51 = vsub.f32 %v3630_v9, %v917_v37  ;;  %vm1800_vm8 = vcmp.eq.f32.partialorder %v3653_v11, %v3824_v55  ;;  %v956_v35 = vsub.f32 %v3653_v11, %v3824_v55  ;;  %v1010_v11 = vmul.f32 1.442695, %v953_v0 }
 0x2d1   : > { %v1832_v52 = vsel %vm1800_vm8, %v3693_v50, 128.0 }
 0x2d2   : > { %1868 = vmin.xlane.f32.xlu0 %v1820_v62  ;;  %v1004_v62 = vmul.f32 1.442695, %v950_v42  ;;  %v1437_v9 = vsel %vm1405_vm2, %v954_v51, 0.0  ;;  %v1012_v37 = vmul.f32 1.442695, %v954_v51  ;;  %vm1184_vm2 = vcmp.ge.f32.partialorder %v3383_v32, 0.0 }
 0x2d4   : > { %1870 = vmin.xlane.f32.xlu1 %v1821_v57  ;;  %v1006_v57 = vmul.f32 1.442695, %v951_v23  ;;  %3152 = vpow2.f32 %v1004_v62 }
 0x2d6   : > { %1475 = vadd.xlane.f32.xlu0 %v1427_v12  ;;  %v3828_v12 = vpop.xlane.xlu1 %922  ;;  %3154 = vpow2.f32 %v1006_v57 }
 0x2d7   : > { %3156 = vpow2.f32 %v1000_v39  ;;  %vm1801_vm13 = vcmp.eq.f32.partialorder %v3658_v30, %v3828_v12 }
 0x2d8   : > { %1477 = vadd.xlane.f32.xlu1 %v1428_v44  ;;  %v1438_v44 = vsel %vm1406_vm3, %v3822_v6, 0.0 }
 0x2da   : > { %1052 = vadd.xlane.f32.xlu0 %v3137_v18  ;;  %v2892_v18 = vunpack.i.l.bf16 %v3682_v5 }
 0x2dc   : > { %1054 = vadd.xlane.f32.xlu1 %v3139_v19  ;;  %v1002_v19 = vmul.f32 1.442695, %v949_v34  ;;  %vm1403_vm6 = vcmp.eq.f32.partialorder %v3693_v50, %v2892_v18  ;;  %v2902_v34 = vunpack.i.l.bf16 %v3686_v38 }
 0x2dd   : > { %v1435_v59 = vsel %vm1403_vm6, %v952_v58, 0.0 }
 0x2de   : > { %1048 = vadd.xlane.f32.xlu0 %v3141_v31  ;;  %3158 = vpow2.f32 %v1002_v19  ;;  %v3153_v13 = vpop.eup %3152  ;;  %vm1407_vm12 = vcmp.eq.f32.partialorder %v3693_v50, %v2902_v34 }
 0x2df   : > { %3160 = vpow2.f32 %v1012_v37  ;;  %v1439_v29 = vsel %vm1407_vm12, %v956_v35, 0.0 }
 0x2e0   : > { %1050 = vadd.xlane.f32.xlu1 %v3143_v8  ;;  %v2893_v8 = vunpack.i.h.bf16 %v3682_v5  ;;  %v3155_v63 = vpop.eup %3154  ;;  %3162 = vpow2.f32 %v1014_v14 }
 0x2e1   : > { %v3157_v43 = vpop.eup %3156  ;;  %3164 = vpow2.f32 %v1008_v45 }
 0x2e2   : > { %1880 = vmin.xlane.f32.xlu0 %v1826_v49  ;;  %v1829_v49 = vsel %vm1797_vm5, %v3693_v50, 128.0  ;;  %vm1404_vm7 = vcmp.eq.f32.partialorder %v3693_v50, %v2893_v8  ;;  %3166 = vpow2.f32 %v1010_v11 }
 0x2e3   : > { %v1436_v5 = vsel %vm1404_vm7, %v953_v0, 0.0  ;;  %3168 = vpow2.f32 %v1020_v17 }
 0x2e4   : > { %1882 = vmin.xlane.f32.xlu1 %v1827_v26 }
 0x2e6   : > { %1487 = vadd.xlane.f32.xlu0 %v1433_v48 }
 0x2e8   : > { %1489 = vadd.xlane.f32.xlu1 %v1434_v25  ;;  %v3159_v48 = vpop.eup %3158  ;;  %v2907_v25 = vunpack.i.l.bf16 %v3690_v2  ;;  %v957_v2 = vsub.f32 %v3658_v30, %v3828_v12 }
 0x2e9   : > { %v3161_v6 = vpop.eup %3160 }
 0x2ea   : > { %1876 = vmin.xlane.f32.xlu0 %v1824_v54  ;;  %vm1409_vm10 = vcmp.eq.f32.partialorder %v3693_v50, %v2907_v25  ;;  %v1018_v55 = vmul.f32 1.442695, %v957_v2  ;;  %v3163_v57 = vpop.eup %3162 }
 0x2ec   : > { %1878 = vmin.xlane.f32.xlu1 %v1825_v47 }
 0x2ee   : > { %1483 = vadd.xlane.f32.xlu0 %v1431_v28  ;;  %v1441_v28 = vsel %vm1409_vm10, %v958_v40, 0.0  ;;  %v4738_v40 = vld [vmem:[#allocation2_spill] sm:$0xff] }
 0x2ef   : > { %vm1185_vm7 = vcmp.ge.f32.partialorder %v4738_v40, 0.0 }
 0x2f0   : > { %1485 = vadd.xlane.f32.xlu1 %v1432_v20 }
 0x2f2   : > { %1060 = vadd.xlane.f32.xlu0 %v3145_v10  ;;  %v1835_v10 = vsel %vm1803_vm11, %v3693_v50, 128.0 }
 0x2f4   : > { %1062 = vadd.xlane.f32.xlu1 %v3147_v33  ;;  %v959_v33 = vsub.f32 %v3650_v16, %v3814_v3 }
 0x2f6   : > { %1056 = vadd.xlane.f32.xlu0 %v3149_v60  ;;  %v1022_v16 = vmul.f32 1.442695, %v959_v33  ;;  %v1442_v21 = vsel %vm1410_vm14, %v959_v33, 0.0 }
 0x2f8   : > { %1058 = vadd.xlane.f32.xlu1 %v3151_v53  ;;  %v2903_v53 = vunpack.i.h.bf16 %v3686_v38  ;;  %v1016_v38 = vmul.f32 1.442695, %v956_v35  ;;  %3170 = vpow2.f32 %v1022_v16 }
 0x2fa   : > { %1888 = vmin.xlane.f32.xlu0 %v1830_v15  ;;  %v1833_v15 = vsel %vm1801_vm13, %v3693_v50, 128.0  ;;  %vm1408_vm15 = vcmp.eq.f32.partialorder %v3693_v50, %v2903_v53  ;;  %3172 = vpow2.f32 %v1016_v38  ;;  %v4741_v38 = vld [vmem:[#allocation9_spill] sm:$0xff] }
 0x2fb   : > { %v1440_v30 = vsel %vm1408_vm15, %v957_v2, 0.0  ;;  %3174 = vpow2.f32 %v1018_v55 }
 0x2fc   : > { %1890 = vmin.xlane.f32.xlu1 %v1831_v61 }
 0x2fe   : > { %1495 = vadd.xlane.f32.xlu0 %v1437_v9  ;;  %v3165_v9 = vpop.eup %3164 }
 0x2ff   : > { %v3832_v27 = vpop.xlane.xlu0 %1840  ;;  %v3167_v50 = vpop.eup %3166 }
 0x300   : > { %1497 = vadd.xlane.f32.xlu1 %v1438_v44  ;;  %v3169_v18 = vpop.eup %3168  ;;  %vm1902_vm1 = vcmp.eq.f32.partialorder %v3832_v27, %v3392_v36  ;;  %v3249_v27 = vmov 0.0   ;;  %v4751_v36 = vld [vmem:[#allocation6_spill] sm:$0xff] }
 0x301   : > { %v3838_v31 = vpop.xlane.xlu1 %1443  ;;  %vm1934_vm3 = vmand %vm1902_vm1, %vm1186_vm0  ;;  %v2631_v37 = vsel %vm1184_vm2, 1.0, %v3249_v27  ;;  %v2632_v35 = vsel %vm1185_vm7, 1.0, %v3249_v27  ;;  %v2633_v55 = vsel %vm1186_vm0, 1.0, %v3249_v27 }
 0x302   : > { %1884 = vmin.xlane.f32.xlu0 %v1828_v22  ;;  %v3171_v58 = vpop.eup %3170 }
 0x303   : > { %v3843_v42 = vpop.xlane.xlu0 %1447 }
 0x304   : > { %1886 = vmin.xlane.f32.xlu1 %v1829_v49  ;;  %v3173_v8 = vpop.eup %3172 }
 0x305   : > { %v3847_v24 = vpop.xlane.xlu1 %1842  ;;  %v3175_v49 = vpop.eup %3174 }
 0x306   : > { %1491 = vadd.xlane.f32.xlu0 %v1435_v59 }
 0x307   : > { %v3850_v23 = vpop.xlane.xlu0 %1836 }
 0x308   : > { %1493 = vadd.xlane.f32.xlu1 %v1436_v5  ;;  %vm1900_vm9 = vcmp.eq.f32.partialorder %v3850_v23, %v3383_v32 }
 0x309   : > { %v3852_v41 = vpop.xlane.xlu1 %1449  ;;  %vm1932_vm13 = vmand %vm1900_vm9, %vm1184_vm2 }
 0x30a   : > { %1068 = vadd.xlane.f32.xlu0 %v3153_v13 }
 0x30b   : > { %v3854_v26 = vpop.xlane.xlu0 %1445 }
 0x30c   : > { %1070 = vadd.xlane.f32.xlu1 %v3155_v63 }
 0x30d   : > { %v3856_v4 = vpop.xlane.xlu1 %1838 }
 0x30e   : > { %1064 = vadd.xlane.f32.xlu0 %v3157_v43  ;;  %vm1901_vm6 = vcmp.eq.f32.partialorder %v3856_v4, %v4738_v40  ;;  %v4739_v4 = vld [vmem:[#allocation8_spill] sm:$0xff] }
 0x30f   : > { %v3860_v46 = vpop.xlane.xlu0 %1848  ;;  %vm1933_vm10 = vmand %vm1901_vm6, %vm1185_vm7  ;;  %vm1190_vm11 = vcmp.ge.f32.partialorder %v4739_v4, 0.0 }
 0x310   : > { %1066 = vadd.xlane.f32.xlu1 %v3159_v48  ;;  %v4737_v48 = vld [vmem:[#allocation5_spill] sm:$0xff]  ;;  %vm1906_vm12 = vcmp.eq.f32.partialorder %v3860_v46, %v4739_v4  ;;  %v2600_v45 = vsel %vm1933_vm10, 1.0, %v3249_v27 }
 0x311   : > { %v3867_v56 = vpop.xlane.xlu1 %1850  ;;  %vm1187_vm4 = vcmp.ge.f32.partialorder %v4737_v48, 0.0  ;;  %vm1903_vm5 = vcmp.eq.f32.partialorder %v3847_v24, %v4737_v48  ;;  %vm1938_vm15 = vmand %vm1906_vm12, %vm1190_vm11 }
 0x312   : > { %1892 = vmin.xlane.f32.xlu0 %v1832_v52  ;;  %vm1935_vm8 = vmand %vm1903_vm5, %vm1187_vm4  ;;  %v2605_v2 = vsel %vm1938_vm15, 1.0, %v3249_v27  ;;  %vm1191_vm5 = vcmp.ge.f32.partialorder %v4741_v38, 0.0  ;;  %vm1907_vm6 = vcmp.eq.f32.partialorder %v3867_v56, %v4741_v38 }
 0x313   : > { %v3870_v54 = vpop.xlane.xlu0 %1455  ;;  %vm1939_vm9 = vmand %vm1907_vm6, %vm1191_vm5 }
 0x314   : > { %1896 = vmin.xlane.f32.xlu1 %v1834_v1  ;;  %v2601_v1 = vsel %vm1934_vm3, 1.0, %v3249_v27 }
 0x315   : > { %v3880_v47 = vpop.xlane.xlu1 %1457  ;;  %v2909_v14 = vpack.i.bf16 %v2631_v37, %v2601_v1  ;;  %v4743_v37 = vld [vmem:[#allocation16_spill] sm:$0xff] }
 0x316   : > { %1503 = vadd.xlane.f32.xlu0 %v1441_v28  ;;  %v2602_v28 = vsel %vm1935_vm8, 1.0, %v3249_v27 }
 0x317   : > { %v3882_v20 = vpop.xlane.xlu0 %1844  ;;  %v2914_v33 = vpack.i.bf16 %v2602_v28, %v2632_v35 }
 0x318   : > { %1898 = vmin.xlane.f32.xlu1 %v1835_v10  ;;  %v4740_v10 = vld [vmem:[#allocation3_spill] sm:$0xff] }
 0x319   : > { %v3891_v60 = vpop.xlane.xlu1 %1846  ;;  %vm1188_vm14 = vcmp.ge.f32.partialorder %v4740_v10, 0.0  ;;  %vm1904_vm1 = vcmp.eq.f32.partialorder %v3882_v20, %v4740_v10 }
 0x31a   : > { %1499 = vadd.xlane.f32.xlu0 %v1439_v29  ;;  %v2599_v29 = vsel %vm1932_vm13, 1.0, %v3249_v27  ;;  %v2635_v17 = vsel %vm1188_vm14, 1.0, %v3249_v27  ;;  %vm1936_vm3 = vmand %vm1904_vm1, %vm1188_vm14  ;;  %vm1194_vm13 = vcmp.ge.f32.partialorder %v4743_v37, 0.0 }
 0x31b   : > { %v3896_v51 = vpop.xlane.xlu0 %1451  ;;  %v2919_v53 = vpack.i.bf16 %v2600_v45, %v2599_v29 }
 0x31c   : > { %1894 = vmin.xlane.f32.xlu1 %v1833_v15 }
 0x31d   : > { %v3900_v3 = vpop.xlane.xlu1 %1453 }
 0x31e   : > { %1505 = vadd.xlane.f32.xlu0 %v1442_v21 }
 0x31f   : > { %v3903_v62 = vpop.xlane.xlu0 %1028 }
 0x320   : > { %1501 = vadd.xlane.f32.xlu1 %v1440_v30 }
 0x321   : > { %v1031_v61 = vpop.xlane.xlu1 %1030 }
 0x322   : > { %1076 = vadd.xlane.f32.xlu0 %v3161_v6  ;;  %3176 = vlog2.f32 %v1031_v61  ;;  %v2924_v6 = vpack.i.bf16 %v2605_v2, %v2635_v17  ;;  %v2603_v61 = vsel %vm1936_vm3, 1.0, %v3249_v27  ;;  %v4745_v17 = vld [vmem:[#allocation17_spill] sm:$0xff] }
 0x323   : > { %v3905_v12 = vpop.xlane.xlu0 %1024  ;;  %vm1195_vm6 = vcmp.ge.f32.partialorder %v4745_v17, 0.0 }
 0x324   : > { %1078 = vadd.xlane.f32.xlu1 %v3163_v57 }
 0x325   : > { %v1027_v39 = vpop.xlane.xlu1 %1026 }
 0x326   : > { %1072 = vadd.xlane.f32.xlu0 %v3165_v9  ;;  %3178 = vlog2.f32 %v1027_v39 }
 0x327   : > { %v3907_v44 = vpop.xlane.xlu0 %1856 }
 0x328   : > { %1074 = vadd.xlane.f32.xlu1 %v3167_v50  ;;  %vm1910_vm15 = vcmp.eq.f32.partialorder %v3907_v44, %v4743_v37 }
 0x329   : > { %v3909_v19 = vpop.xlane.xlu1 %1858  ;;  %vm1942_vm1 = vmand %vm1910_vm15, %vm1194_vm13 }
 0x32a   : > { %1084 = vadd.xlane.f32.xlu0 %v3169_v18 }
 0x32b   : > { %v3911_v22 = vpop.xlane.xlu0 %1463 }
 0x32c   : > { %1086 = vadd.xlane.f32.xlu1 %v3171_v58  ;;  %v3177_v24 = vpop.eup %3176  ;;  %v2929_v58 = vpack.i.bf16 %v2603_v61, %v2633_v55 }
 0x32d   : > { %v3913_v0 = vpop.xlane.xlu1 %1465  ;;  %v1095_v46 = vmul.f32 0.6931472, %v3177_v24 }
 0x32e   : > { %1080 = vadd.xlane.f32.xlu0 %v3173_v8 }
 0x32f   : > { %v3915_v59 = vpop.xlane.xlu0 %1852  ;;  %v1510_v16 = vsub.f32 %v1095_v46, %v3852_v41  ;;  %v4742_v41 = vld [vmem:[#allocation4_spill] sm:$0xff] }
 0x330   : > { %1082 = vadd.xlane.f32.xlu1 %v3175_v49  ;;  %v3179_v7 = vpop.eup %3178  ;;  %vm1189_vm8 = vcmp.ge.f32.partialorder %v4742_v41, 0.0  ;;  %vm1905_vm10 = vcmp.eq.f32.partialorder %v3891_v60, %v4742_v41  ;;  %v2606_v49 = vsel %vm1939_vm9, 1.0, %v3249_v27  ;;  %vm1911_vm9 = vcmp.eq.f32.partialorder %v3909_v19, %v4745_v17 }
 0x331   : > { %v3917_v5 = vpop.xlane.xlu1 %1854  ;;  %v1091_v20 = vmul.f32 0.6931472, %v3179_v7  ;;  %v1542_v9 = vsel %vm1187_vm4, %v1510_v16, 0.0  ;;  %v2636_v8 = vsel %vm1189_vm8, 1.0, %v3249_v27  ;;  %vm1937_vm12 = vmand %vm1905_vm10, %vm1189_vm8  ;;  %v2637_v16 = vsel %vm1190_vm11, 1.0, %v3249_v27 }
 0x332   : > { %v2934_v24 = vpack.i.bf16 %v2606_v49, %v2636_v8  ;;  %v2604_v40 = vsel %vm1937_vm12, 1.0, %v3249_v27  ;;  %vm1943_vm10 = vmand %vm1911_vm9, %vm1195_vm6 }
 0x333   : > { %v3919_v13 = vpop.xlane.xlu0 %1459  ;;  %v1508_v39 = vsub.f32 %v1091_v20, %v3854_v26 }
 0x335   : > { %v3921_v63 = vpop.xlane.xlu1 %1461  ;;  %v1540_v60 = vsel %vm1185_vm7, %v1508_v39, 0.0 }
 0x337   : > { %v1037_v43 = vpop.xlane.xlu0 %1036 }
 0x338   : > { %3180 = vlog2.f32 %v1037_v43 }
 0x339   : > { %v1039_v25 = vpop.xlane.xlu1 %1038 }
 0x33b   : > { %v1033_v52 = vpop.xlane.xlu0 %1032 }
 0x33c   : > { %3182 = vlog2.f32 %v1033_v52 }
 0x33d   : > { %v1035_v34 = vpop.xlane.xlu1 %1034  ;;  %3184 = vlog2.f32 %v1039_v25 }
 0x33e   : > { %3186 = vlog2.f32 %v1035_v34  ;;  %v2634_v34 = vsel %vm1187_vm4, 1.0, %v3249_v27 }
 0x33f   : > { %v3954_v23 = vpop.xlane.xlu0 %1864  ;;  %v2939_v46 = vpack.i.bf16 %v2604_v40, %v2634_v34 }
 0x341   : > { %v3962_v11 = vpop.xlane.xlu1 %1866  ;;  %2910 = vrot.lane.b32.xlu1 %v2909_v14, %s3250_s12  ;;  %v4744_v14 = vld [vmem:[#allocation12_spill] sm:$0xff] }
 0x342   : > { %v3181_v21 = vpop.eup %3180  ;;  %vm1192_vm7 = vcmp.ge.f32.partialorder %v4744_v14, 0.0  ;;  %vm1908_vm4 = vcmp.eq.f32.partialorder %v3915_v59, %v4744_v14  ;;  %v2641_v14 = vsel %vm1194_vm13, 1.0, %v3249_v27 }
 0x343   : > { %v3970_v15 = vpop.xlane.xlu0 %1471  ;;  %v1101_v56 = vmul.f32 0.6931472, %v3181_v21  ;;  %v2639_v7 = vsel %vm1192_vm7, 1.0, %v3249_v27  ;;  %vm1940_vm3 = vmand %vm1908_vm4, %vm1192_vm7 }
 0x344   : > { %2915 = vrot.lane.b32.xlu0 %v2914_v33, %s3250_s12  ;;  %v2609_v33 = vsel %vm1942_vm1, 1.0, %v3249_v27  ;;  %v2607_v21 = vsel %vm1940_vm3, 1.0, %v3249_v27 }
 0x345   : > { %v3979_v30 = vpop.xlane.xlu1 %1473  ;;  %2920 = vrot.lane.b32.xlu1 %v2919_v53, %s3250_s12  ;;  %v1513_v25 = vsub.f32 %v1101_v56, %v3870_v54  ;;  %v2944_v20 = vpack.i.bf16 %v2609_v33, %v2639_v7  ;;  %v2949_v61 = vpack.i.bf16 %v2607_v21, %v2637_v16  ;;  %v4750_v21 = vld [vmem:[#allocation21_spill] sm:$0xff] }
 0x346   : > { %v3183_v50 = vpop.eup %3182 }
 0x347   : > { %v3986_v57 = vpop.xlane.xlu0 %1860  ;;  %v1097_v26 = vmul.f32 0.6931472, %v3183_v50  ;;  %v3185_v52 = vpop.eup %3184  ;;  %v1545_v44 = vsel %vm1190_vm11, %v1513_v25, 0.0 }
 0x348   : > { %2925 = vrot.lane.b32.xlu0 %v2924_v6, %s3250_s12  ;;  %v1103_v35 = vmul.f32 0.6931472, %v3185_v52  ;;  %v3187_v45 = vpop.eup %3186  ;;  %v4746_v6 = vld [vmem:[#allocation13_spill] sm:$0xff] }
 0x349   : > { %v3997_v18 = vpop.xlane.xlu1 %1862  ;;  %1609 = vrot.lane.b32.xlu1 %v1542_v9, %s3250_s12  ;;  %v1511_v28 = vsub.f32 %v1097_v26, %v3896_v51  ;;  %v1099_v51 = vmul.f32 0.6931472, %v3187_v45  ;;  %vm1909_vm11 = vcmp.eq.f32.partialorder %v3917_v5, %v4746_v6  ;;  %v2610_v9 = vsel %vm1943_vm10, 1.0, %v3249_v27 }
 0x34a   : > { %v1514_v53 = vsub.f32 %v1103_v35, %v3880_v47 }
 0x34b   : > { %v4004_v43 = vpop.xlane.xlu0 %1467  ;;  %v1543_v59 = vsel %vm1188_vm14, %v1511_v28, 0.0  ;;  %vm1193_vm14 = vcmp.ge.f32.partialorder %v4746_v6, 0.0  ;;  %v1512_v19 = vsub.f32 %v1099_v51, %v3900_v3 }
 0x34c   : > { %2930 = vrot.lane.b32.xlu0 %v2929_v58, %s3250_s12  ;;  %v1546_v47 = vsel %vm1191_vm5, %v1514_v53, 0.0  ;;  %v2640_v56 = vsel %vm1193_vm14, 1.0, %v3249_v27  ;;  %vm1941_vm12 = vmand %vm1909_vm11, %vm1193_vm14 }
 0x34d   : > { %v4015_v1 = vpop.xlane.xlu1 %1469  ;;  %1605 = vrot.lane.b32.xlu1 %v1540_v60, %s3250_s12  ;;  %v1544_v3 = vsel %vm1189_vm8, %v1512_v19, 0.0  ;;  %v2954_v26 = vpack.i.bf16 %v2610_v9, %v2640_v56  ;;  %v2638_v60 = vsel %vm1191_vm5, 1.0, %v3249_v27  ;;  %v2608_v41 = vsel %vm1941_vm12, 1.0, %v3249_v27 }
 0x34f   : > { %v1045_v54 = vpop.xlane.xlu0 %1044 }
 0x350   : > { %3188 = vlog2.f32 %v1045_v54  ;;  %2935 = vrot.lane.b32.xlu0 %v2934_v24, %s3250_s12  ;;  %v4748_v24 = vld [vmem:[#allocation20_spill] sm:$0xff]  ;;  %v2959_v54 = vpack.i.bf16 %v2608_v41, %v2638_v60 }
 0x351   : > { %v1047_v48 = vpop.xlane.xlu1 %1046  ;;  %1615 = vrot.lane.b32.xlu1 %v1545_v44, %s3250_s12  ;;  %vm1196_vm8 = vcmp.ge.f32.partialorder %v4748_v24, 0.0  ;;  %vm1912_vm5 = vcmp.eq.f32.partialorder %v3986_v57, %v4748_v24  ;;  %v4752_v60 = vld [vmem:[#allocation24_spill] sm:$0xff] }
 0x352   : > { %3190 = vlog2.f32 %v1047_v48  ;;  %v2643_v35 = vsel %vm1196_vm8, 1.0, %v3249_v27  ;;  %vm1944_vm3 = vmand %vm1912_vm5, %vm1196_vm8 }
 0x353   : > { %v1041_v29 = vpop.xlane.xlu0 %1040  ;;  %v2611_v33 = vsel %vm1944_vm3, 1.0, %v3249_v27 }
 0x354   : > { %3192 = vlog2.f32 %v1041_v29  ;;  %2940 = vrot.lane.b32.xlu0 %v2939_v46, %s3250_s12  ;;  %v2969_v37 = vpack.i.bf16 %v2611_v33, %v2641_v14  ;;  %v4754_v33 = vld [vmem:[#allocation25_spill] sm:$0xff] }
 0x355   : > { %v1043_v2 = vpop.xlane.xlu1 %1042  ;;  %1611 = vrot.lane.b32.xlu1 %v1543_v59, %s3250_s12  ;;  %v4749_v59 = vld [vmem:[#allocation23_spill] sm:$0xff] }
 0x356   : > { %3194 = vlog2.f32 %v1043_v2  ;;  %vm1915_vm9 = vcmp.eq.f32.partialorder %v3962_v11, %v4749_v59 }
 0x357   : > { %v4050_v10 = vpop.xlane.xlu0 %1872  ;;  %3196 = vlog2.f32 %v3903_v62  ;;  %v4747_v62 = vld [vmem:[#allocation22_spill] sm:$0xff] }
 0x358   : > { %2945 = vrot.lane.b32.xlu0 %v2944_v20, %s3250_s12  ;;  %vm1198_vm15 = vcmp.ge.f32.partialorder %v4747_v62, 0.0  ;;  %vm1914_vm1 = vcmp.eq.f32.partialorder %v3954_v23, %v4747_v62  ;;  %3198 = vlog2.f32 %v3905_v12  ;;  %vm1918_vm12 = vcmp.eq.f32.partialorder %v4050_v10, %v4751_v36 }
 0x359   : > { %v4061_v4 = vpop.xlane.xlu1 %1874  ;;  %1617 = vrot.lane.b32.xlu1 %v1546_v47, %s3250_s12  ;;  %vm1946_vm4 = vmand %vm1914_vm1, %vm1198_vm15  ;;  %vm1200_vm1 = vcmp.ge.f32.partialorder %v4752_v60, 0.0  ;;  %v2645_v24 = vsel %vm1198_vm15, 1.0, %v3249_v27 }
 0x35a   : > { %v3189_v55 = vpop.eup %3188  ;;  %v2613_v44 = vsel %vm1946_vm4, 1.0, %v3249_v27 }
 0x35b   : > { %v1109_v39 = vmul.f32 0.6931472, %v3189_v55  ;;  %v4069_v50 = vpop.xlane.xlu0 %1479  ;;  %v2964_v46 = vpack.i.bf16 %v2613_v44, %v2643_v35 }
 0x35c   : > { %2950 = vrot.lane.b32.xlu0 %v2949_v61, %s3250_s12  ;;  %v3191_v5 = vpop.eup %3190 }
 0x35d   : > { %v4079_v58 = vpop.xlane.xlu1 %1481  ;;  %1613 = vrot.lane.b32.xlu1 %v1544_v3, %s3250_s12  ;;  %v1517_v8 = vsub.f32 %v1109_v39, %v3911_v22  ;;  %v1111_v22 = vmul.f32 0.6931472, %v3191_v5 }
 0x35e   : > { %v3193_v49 = vpop.eup %3192 }
 0x35f   : > { %v1105_v25 = vmul.f32 0.6931472, %v3193_v49  ;;  %v4087_v52 = vpop.xlane.xlu0 %1868  ;;  %v1549_v23 = vsel %vm1194_vm13, %v1517_v8, 0.0  ;;  %vm1197_vm13 = vcmp.ge.f32.partialorder %v4750_v21, 0.0 }
 0x360   : > { %2955 = vrot.lane.b32.xlu0 %v2954_v26, %s3250_s12  ;;  %v3195_v34 = vpop.eup %3194 }
 0x361   : > { %v4098_v38 = vpop.xlane.xlu1 %1870  ;;  %1623 = vrot.lane.b32.xlu1 %v1549_v23, %s3250_s12  ;;  %v1515_v40 = vsub.f32 %v1105_v25, %v3919_v13  ;;  %v3197_v45 = vpop.eup %3196  ;;  %v1107_v57 = vmul.f32 0.6931472, %v3195_v34  ;;  %v1518_v13 = vsub.f32 %v1111_v22, %v3913_v0 }
 0x362   : > { %v1093_v7 = vmul.f32 0.6931472, %v3197_v45  ;;  %v3199_v2 = vpop.eup %3198 }
 0x363   : > { %v4106_v28 = vpop.xlane.xlu0 %1475  ;;  %v1547_v12 = vsel %vm1192_vm7, %v1515_v40, 0.0  ;;  %v1550_v51 = vsel %vm1195_vm6, %v1518_v13, 0.0  ;;  %v1516_v0 = vsub.f32 %v1107_v57, %v3921_v63  ;;  %vm1199_vm7 = vcmp.ge.f32.partialorder %v4749_v59, 0.0 }
 0x364   : > { %2960 = vrot.lane.b32.xlu0 %v2959_v54, %s3250_s12  ;;  %v1509_v16 = vsub.f32 %v1093_v7, %v3843_v42  ;;  %vm1947_vm10 = vmand %vm1915_vm9, %vm1199_vm7  ;;  %v1089_v47 = vmul.f32 0.6931472, %v3199_v2  ;;  %v2644_v42 = vsel %vm1197_vm13, 1.0, %v3249_v27  ;;  %v2647_v54 = vsel %vm1200_vm1, 1.0, %v3249_v27 }
 0x365   : > { %v4114_v48 = vpop.xlane.xlu1 %1477  ;;  %1619 = vrot.lane.b32.xlu1 %v1547_v12, %s3250_s12  ;;  %v1548_v63 = vsel %vm1193_vm14, %v1516_v0, 0.0  ;;  %v2614_v19 = vsel %vm1947_vm10, 1.0, %v3249_v27  ;;  %vm1913_vm14 = vcmp.eq.f32.partialorder %v3997_v18, %v4750_v21  ;;  %v2646_v2 = vsel %vm1199_vm7, 1.0, %v3249_v27  ;;  %v4756_v21 = vld [vmem:[#allocation26_spill] sm:$0xff] }
 0x366   : > { %v1541_v61 = vsel %vm1186_vm0, %v1509_v16, 0.0  ;;  %v2974_v9 = vpack.i.bf16 %v2614_v19, %v2644_v42  ;;  %v1507_v39 = vsub.f32 %v1089_v47, %v3838_v31  ;;  %vm1945_vm11 = vmand %vm1913_vm14, %vm1197_vm13  ;;  %vm1202_vm0 = vcmp.ge.f32.partialorder %v4751_v36, 0.0 }
 0x367   : > { %v1053_v29 = vpop.xlane.xlu0 %1052  ;;  %v2642_v31 = vsel %vm1195_vm6, 1.0, %v3249_v27  ;;  %v2612_v25 = vsel %vm1945_vm11, 1.0, %v3249_v27  ;;  %vm1950_vm4 = vmand %vm1918_vm12, %vm1202_vm0 }
 0x368   : > { %3200 = vlog2.f32 %v1053_v29  ;;  %2965 = vrot.lane.b32.xlu0 %v2964_v46, %s3250_s12  ;;  %v1539_v41 = vsel %vm1184_vm2, %v1507_v39, 0.0  ;;  %vm1916_vm2 = vcmp.eq.f32.partialorder %v4087_v52, %v4752_v60  ;;  %v2979_v40 = vpack.i.bf16 %v2612_v25, %v2642_v31 }
 0x369   : > { %v1055_v53 = vpop.xlane.xlu1 %1054  ;;  %1625 = vrot.lane.b32.xlu1 %v1550_v51, %s3250_s12  ;;  %v2617_v35 = vsel %vm1950_vm4, 1.0, %v3249_v27  ;;  %vm1948_vm6 = vmand %vm1916_vm2, %vm1200_vm1 }
 0x36a   : > { %3202 = vlog2.f32 %v1055_v53  ;;  %v2984_v13 = vpack.i.bf16 %v2617_v35, %v2647_v54 }
 0x36b   : > { %v1049_v20 = vpop.xlane.xlu0 %1048 }
 0x36c   : > { %3204 = vlog2.f32 %v1049_v20  ;;  %2970 = vrot.lane.b32.xlu0 %v2969_v37, %s3250_s12 }
 0x36d   : > { %v1051_v11 = vpop.xlane.xlu1 %1050  ;;  %1621 = vrot.lane.b32.xlu1 %v1548_v63, %s3250_s12 }
 0x36e   : > { %3206 = vlog2.f32 %v1051_v11 }
 0x36f   : > { %v4141_v55 = vpop.xlane.xlu0 %1880 }
 0x370   : > { %1607 = vrot.lane.b32.xlu0 %v1541_v61, %s3250_s12 }
 0x371   : > { %v4148_v6 = vpop.xlane.xlu1 %1882 }
 0x372   : > { %v3201_v56 = vpop.eup %3200 }
 0x373   : > { %v1117_v3 = vmul.f32 0.6931472, %v3201_v56  ;;  %v4151_v5 = vpop.xlane.xlu0 %1487  ;;  %v4757_v56 = vld [vmem:[#allocation11_spill] sm:$0xff] }
 0x374   : > { %v3203_v8 = vpop.eup %3202  ;;  %2975 = vrot.lane.b32.xlu0 %v2974_v9, %s3250_s12  ;;  %vm1207_vm2 = vcmp.ge.f32.partialorder %v4757_v56, 0.0 }
 0x375   : > { %v4159_v18 = vpop.xlane.xlu1 %1489  ;;  %v1521_v49 = vsub.f32 %v1117_v3, %v3970_v15  ;;  %v1119_v23 = vmul.f32 0.6931472, %v3203_v8 }
 0x376   : > { %v3205_v26 = vpop.eup %3204 }
 0x377   : > { %v1113_v22 = vmul.f32 0.6931472, %v3205_v26  ;;  %v4169_v34 = vpop.xlane.xlu0 %1876  ;;  %v1553_v10 = vsel %vm1198_vm15, %v1521_v49, 0.0  ;;  %v1522_v57 = vsub.f32 %v1119_v23, %v3979_v30  ;;  %v2615_v30 = vsel %vm1948_vm6, 1.0, %v3249_v27  ;;  %v4758_v49 = vld [vmem:[#allocation27_spill] sm:$0xff] }
 0x378   : > { %v3207_v15 = vpop.eup %3206  ;;  %1603 = vrot.lane.b32.xlu0 %v1539_v41, %s3250_s12  ;;  %1631 = vrot.lane.b32.xlu1 %v1553_v10, %s3250_s12  ;;  %vm1917_vm15 = vcmp.eq.f32.partialorder %v4098_v38, %v4754_v33  ;;  %v2989_v62 = vpack.i.bf16 %v2615_v30, %v2645_v24  ;;  %v4755_v38 = vld [vmem:[#allocation10_spill] sm:$0xff]  ;;  %vm1920_vm4 = vcmp.eq.f32.partialorder %v4169_v34, %v4756_v21  ;;  %v2649_v26 = vsel %vm1202_vm0, 1.0, %v3249_v27  ;;  %v4760_v24 = vld [vmem:[#allocation28_spill] sm:$0xff] }
 0x379   : > { %v4179_v32 = vpop.xlane.xlu1 %1878  ;;  %v1519_v17 = vsub.f32 %v1113_v22, %v4004_v43  ;;  %v1115_v44 = vmul.f32 0.6931472, %v3207_v15  ;;  %v4753_v43 = vld [vmem:[#allocation7_spill] sm:$0xff]  ;;  %v1554_v7 = vsel %vm1199_vm7, %v1522_v57, 0.0  ;;  %vm1206_vm14 = vcmp.ge.f32.partialorder %v4755_v38, 0.0 }
 0x37a   : > { %vm1203_vm5 = vcmp.ge.f32.partialorder %v4753_v43, 0.0  ;;  %vm1919_vm3 = vcmp.eq.f32.partialorder %v4061_v4, %v4753_v43  ;;  %vm1922_vm11 = vcmp.eq.f32.partialorder %v4141_v55, %v4755_v38  ;;  %vm1923_vm6 = vcmp.eq.f32.partialorder %v4148_v6, %v4757_v56 }
 0x37b   : > { %v4186_v12 = vpop.xlane.xlu0 %1483  ;;  %v1551_v45 = vsel %vm1196_vm8, %v1519_v17, 0.0  ;;  %v1520_v14 = vsub.f32 %v1115_v44, %v4015_v1  ;;  %vm1201_vm8 = vcmp.ge.f32.partialorder %v4754_v33, 0.0  ;;  %vm1951_vm9 = vmand %vm1919_vm3, %vm1203_vm5  ;;  %vm1205_vm3 = vcmp.ge.f32.partialorder %v4758_v49, 0.0 }
 0x37c   : > { %2980 = vrot.lane.b32.xlu0 %v2979_v40, %s3250_s12  ;;  %1627 = vrot.lane.b32.xlu1 %v1551_v45, %s3250_s12  ;;  %v2648_v1 = vsel %vm1201_vm8, 1.0, %v3249_v27  ;;  %v2618_v29 = vsel %vm1951_vm9, 1.0, %v3249_v27  ;;  %vm1949_vm10 = vmand %vm1917_vm15, %vm1201_vm8  ;;  %vm1921_vm15 = vcmp.eq.f32.partialorder %v4179_v32, %v4758_v49  ;;  %v2652_v10 = vsel %vm1205_vm3, 1.0, %v3249_v27 }
 0x37d   : > { %v4198_v52 = vpop.xlane.xlu1 %1485  ;;  %v1552_v0 = vsel %vm1197_vm13, %v1520_v14, 0.0  ;;  %v2994_v37 = vpack.i.bf16 %v2618_v29, %v2648_v1  ;;  %v2616_v20 = vsel %vm1949_vm10, 1.0, %v3249_v27  ;;  %vm1204_vm13 = vcmp.ge.f32.partialorder %v4756_v21, 0.0  ;;  %vm1954_vm12 = vmand %vm1922_vm11, %vm1206_vm14 }
 0x37e   : > { %v2999_v47 = vpack.i.bf16 %v2616_v20, %v2646_v2  ;;  %v2651_v59 = vsel %vm1204_vm13, 1.0, %v3249_v27  ;;  %v2621_v42 = vsel %vm1954_vm12, 1.0, %v3249_v27  ;;  %vm1952_vm7 = vmand %vm1920_vm4, %vm1204_vm13  ;;  %v2650_v60 = vsel %vm1203_vm5, 1.0, %v3249_v27 }
 0x37f   : > { %v1061_v46 = vpop.xlane.xlu0 %1060  ;;  %v3004_v8 = vpack.i.bf16 %v2621_v42, %v2651_v59  ;;  %v2619_v31 = vsel %vm1952_vm7, 1.0, %v3249_v27  ;;  %vm1955_vm9 = vmand %vm1923_vm6, %vm1207_vm2  ;;  %v2653_v33 = vsel %vm1206_vm14, 1.0, %v3249_v27  ;;  %v4763_v42 = vld [vmem:[#allocation18_spill] sm:$0xff] }
 0x380   : > { %3208 = vlog2.f32 %v1061_v46  ;;  %2985 = vrot.lane.b32.xlu0 %v2984_v13, %s3250_s12  ;;  %1633 = vrot.lane.b32.xlu1 %v1554_v7, %s3250_s12  ;;  %v3009_v36 = vpack.i.bf16 %v2619_v31, %v2649_v26  ;;  %v2622_v15 = vsel %vm1955_vm9, 1.0, %v3249_v27 }
 0x381   : > { %v1063_v4 = vpop.xlane.xlu1 %1062  ;;  %v3014_v44 = vpack.i.bf16 %v2622_v15, %v2652_v10 }
 0x382   : > { %3210 = vlog2.f32 %v1063_v4  ;;  %v4761_v4 = vld [vmem:[#allocation15_spill] sm:$0xff] }
 0x383   : > { %v1057_v51 = vpop.xlane.xlu0 %1056  ;;  %vm1211_vm7 = vcmp.ge.f32.partialorder %v4761_v4, 0.0 }
 0x384   : > { %3212 = vlog2.f32 %v1057_v51  ;;  %2990 = vrot.lane.b32.xlu0 %v2989_v62, %s3250_s12  ;;  %1629 = vrot.lane.b32.xlu1 %v1552_v0, %s3250_s12  ;;  %v4762_v0 = vld [vmem:[#allocation29_spill] sm:$0xff]  ;;  %v2658_v56 = vsel %vm1211_vm7, 1.0, %v3249_v27 }
 0x385   : > { %v1059_v53 = vpop.xlane.xlu1 %1058 }
 0x386   : > { %3214 = vlog2.f32 %v1059_v53 }
 0x387   : > { %v1889_v16 = vpop.xlane.xlu0 %1888 }
 0x388   : > { %2995 = vrot.lane.b32.xlu0 %v2994_v37, %s3250_s12 }
 0x389   : > { %v4237_v63 = vpop.xlane.xlu1 %1890 }
 0x38a   : > { %v3209_v11 = vpop.eup %3208  ;;  %vm1927_vm6 = vcmp.eq.f32.partialorder %v4237_v63, %v4761_v4 }
 0x38b   : > { %v1125_v19 = vmul.f32 0.6931472, %v3209_v11  ;;  %v4243_v55 = vpop.xlane.xlu0 %1495  ;;  %vm1959_vm9 = vmand %vm1927_vm6, %vm1211_vm7 }
 0x38c   : > { %v3211_v61 = vpop.eup %3210  ;;  %3000 = vrot.lane.b32.xlu0 %v2999_v47, %s3250_s12 }
 0x38d   : > { %v4251_v9 = vpop.xlane.xlu1 %1497  ;;  %v1525_v39 = vsub.f32 %v1125_v19, %v4069_v50  ;;  %v1127_v41 = vmul.f32 0.6931472, %v3211_v61 }
 0x38e   : > { %v3213_v3 = vpop.eup %3212 }
 0x38f   : > { %v1121_v25 = vmul.f32 0.6931472, %v3213_v3  ;;  %v1885_v23 = vpop.xlane.xlu0 %1884  ;;  %v1557_v6 = vsel %vm1202_vm0, %v1525_v39, 0.0  ;;  %v1526_v35 = vsub.f32 %v1127_v41, %v4079_v58  ;;  %vm1953_vm0 = vmand %vm1921_vm15, %vm1205_vm3  ;;  %v2654_v3 = vsel %vm1207_vm2, 1.0, %v3249_v27 }
 0x390   : > { %v3215_v22 = vpop.eup %3214  ;;  %3005 = vrot.lane.b32.xlu0 %v3004_v8, %s3250_s12  ;;  %1639 = vrot.lane.b32.xlu1 %v1557_v6, %s3250_s12  ;;  %v2620_v58 = vsel %vm1953_vm0, 1.0, %v3249_v27  ;;  %vm1924_vm4 = vcmp.eq.f32.partialorder %v1885_v23, %v4760_v24  ;;  %v4764_v6 = vld [vmem:[#allocation30_spill] sm:$0xff] }
 0x391   : > { %v1523_v50 = vsub.f32 %v1121_v25, %v4106_v28  ;;  %v1887_v34 = vpop.xlane.xlu1 %1886  ;;  %v1123_v17 = vmul.f32 0.6931472, %v3215_v22  ;;  %v4759_v28 = vld [vmem:[#allocation14_spill] sm:$0xff]  ;;  %v1558_v13 = vsel %vm1203_vm5, %v1526_v35, 0.0  ;;  %v3019_v46 = vpack.i.bf16 %v2620_v58, %v2650_v60 }
 0x392   : > { %vm1210_vm10 = vcmp.ge.f32.partialorder %v4759_v28, 0.0  ;;  %vm1926_vm11 = vcmp.eq.f32.partialorder %v1889_v16, %v4759_v28  ;;  %vm1925_vm15 = vcmp.eq.f32.partialorder %v1887_v34, %v4762_v0  ;;  %v2626_v16 = vsel %vm1959_vm9, 1.0, %v3249_v27 }
 0x393   : > { %v4272_v40 = vpop.xlane.xlu0 %1491  ;;  %v1555_v54 = vsel %vm1200_vm1, %v1523_v50, 0.0  ;;  %v1524_v45 = vsub.f32 %v1123_v17, %v4114_v48  ;;  %vm1208_vm1 = vcmp.ge.f32.partialorder %v4760_v24, 0.0  ;;  %vm1958_vm12 = vmand %vm1926_vm11, %vm1210_vm10  ;;  %vm1214_vm11 = vcmp.ge.f32.partialorder %v4763_v42, 0.0  ;;  %v4765_v17 = vld [vmem:[#allocation31_spill] sm:$0xff] }
 0x394   : > { %3010 = vrot.lane.b32.xlu0 %v3009_v36, %s3250_s12  ;;  %1635 = vrot.lane.b32.xlu1 %v1555_v54, %s3250_s12  ;;  %v2655_v48 = vsel %vm1208_vm1, 1.0, %v3249_v27  ;;  %v2625_v43 = vsel %vm1958_vm12, 1.0, %v3249_v27  ;;  %vm1956_vm5 = vmand %vm1924_vm4, %vm1208_vm1 }
 0x395   : > { %v4283_v32 = vpop.xlane.xlu1 %1493  ;;  %v1556_v14 = vsel %vm1201_vm8, %v1524_v45, 0.0  ;;  %v3024_v1 = vpack.i.bf16 %v2625_v43, %v2655_v48  ;;  %v2623_v29 = vsel %vm1956_vm5, 1.0, %v3249_v27  ;;  %vm1209_vm8 = vcmp.ge.f32.partialorder %v4762_v0, 0.0  ;;  %v4766_v45 = vld [vmem:[#allocation19_spill] sm:$0xff] }
 0x396   : > { %v3029_v2 = vpack.i.bf16 %v2623_v29, %v2653_v33  ;;  %v2656_v20 = vsel %vm1209_vm8, 1.0, %v3249_v27  ;;  %vm1957_vm0 = vmand %vm1925_vm15, %vm1209_vm8  ;;  %vm1212_vm5 = vcmp.ge.f32.partialorder %v4764_v6, 0.0 }
 0x397   : > { %v1069_v57 = vpop.xlane.xlu0 %1068  ;;  %v3034_v39 = vpack.i.bf16 %v2626_v16, %v2656_v20  ;;  %v2624_v8 = vsel %vm1957_vm0, 1.0, %v3249_v27  ;;  %v2659_v38 = vsel %vm1212_vm5, 1.0, %v3249_v27  ;;  %vm1215_vm0 = vcmp.ge.f32.partialorder %v4766_v45, 0.0 }
 0x398   : > { %3216 = vlog2.f32 %v1069_v57  ;;  %3015 = vrot.lane.b32.xlu0 %v3014_v44, %s3250_s12  ;;  %1641 = vrot.lane.b32.xlu1 %v1558_v13, %s3250_s12  ;;  %v3039_v50 = vpack.i.bf16 %v2624_v8, %v2654_v3  ;;  %v2661_v20 = vsel %vm1214_vm11, 1.0, %v3249_v27 }
 0x399   : > { %v1071_v30 = vpop.xlane.xlu1 %1070 }
 0x39a   : > { %3218 = vlog2.f32 %v1071_v30 }
 0x39b   : > { %v1065_v7 = vpop.xlane.xlu0 %1064 }
 0x39c   : > { %3220 = vlog2.f32 %v1065_v7  ;;  %3020 = vrot.lane.b32.xlu0 %v3019_v46, %s3250_s12  ;;  %1637 = vrot.lane.b32.xlu1 %v1556_v14, %s3250_s12 }
 0x39d   : > { %v1067_v62 = vpop.xlane.xlu1 %1066 }
 0x39e   : > { %3222 = vlog2.f32 %v1067_v62 }
 0x39f   : > { %v1893_v51 = vpop.xlane.xlu0 %1892 }
 0x3a0   : > { %3025 = vrot.lane.b32.xlu0 %v3024_v1, %s3250_s12  ;;  %vm1928_vm6 = vcmp.eq.f32.partialorder %v1893_v51, %v4764_v6 }
 0x3a1   : > { %v1897_v53 = vpop.xlane.xlu1 %1896 }
 0x3a2   : > { %v3217_v37 = vpop.eup %3216  ;;  %vm1930_vm12 = vcmp.eq.f32.partialorder %v1897_v53, %v4763_v42 }
 0x3a3   : > { %v1133_v63 = vmul.f32 0.6931472, %v3217_v37  ;;  %v4324_v11 = vpop.xlane.xlu0 %1503  ;;  %vm1962_vm4 = vmand %vm1930_vm12, %vm1214_vm11 }
 0x3a4   : > { %v3219_v47 = vpop.eup %3218  ;;  %3030 = vrot.lane.b32.xlu0 %v3029_v2, %s3250_s12  ;;  %v2629_v36 = vsel %vm1962_vm4, 1.0, %v3249_v27 }
 0x3a5   : > { %v1529_v59 = vsub.f32 %v1133_v63, %v4151_v5  ;;  %v1899_v19 = vpop.xlane.xlu1 %1898  ;;  %v1135_v26 = vmul.f32 0.6931472, %v3219_v47  ;;  %v3044_v35 = vpack.i.bf16 %v2629_v36, %v2659_v38 }
 0x3a6   : > { %v3221_v61 = vpop.eup %3220  ;;  %vm1931_vm12 = vcmp.eq.f32.partialorder %v1899_v19, %v4766_v45 }
 0x3a7   : > { %v1129_v31 = vmul.f32 0.6931472, %v3221_v61  ;;  %v4336_v41 = vpop.xlane.xlu0 %1499  ;;  %v1561_v5 = vsel %vm1206_vm14, %v1529_v59, 0.0  ;;  %v1530_v34 = vsub.f32 %v1135_v26, %v4159_v18  ;;  %vm1960_vm14 = vmand %vm1928_vm6, %vm1212_vm5  ;;  %v2657_v18 = vsel %vm1210_vm10, 1.0, %v3249_v27 }
 0x3a8   : > { %v3223_v25 = vpop.eup %3222  ;;  %3035 = vrot.lane.b32.xlu0 %v3034_v39, %s3250_s12  ;;  %1647 = vrot.lane.b32.xlu1 %v1561_v5, %s3250_s12  ;;  %v2627_v21 = vsel %vm1960_vm14, 1.0, %v3249_v27 }
 0x3a9   : > { %v1527_v23 = vsub.f32 %v1129_v31, %v4186_v12  ;;  %v1895_v22 = vpop.xlane.xlu1 %1894  ;;  %v1131_v10 = vmul.f32 0.6931472, %v3223_v25  ;;  %v1562_v58 = vsel %vm1207_vm2, %v1530_v34, 0.0  ;;  %v3049_v57 = vpack.i.bf16 %v2627_v21, %v2657_v18  ;;  %vm1963_vm2 = vmand %vm1931_vm12, %vm1215_vm0 }
 0x3aa   : > { %vm1929_vm9 = vcmp.eq.f32.partialorder %v1895_v22, %v4765_v17  ;;  %v2630_v14 = vsel %vm1963_vm2, 1.0, %v3249_v27 }
 0x3ab   : > { %v4352_v15 = vpop.xlane.xlu0 %1505  ;;  %v1559_v12 = vsel %vm1204_vm13, %v1527_v23, 0.0  ;;  %v1528_v44 = vsub.f32 %v1131_v10, %v4198_v52  ;;  %vm1213_vm13 = vcmp.ge.f32.partialorder %v4765_v17, 0.0  ;;  %v2662_v17 = vsel %vm1215_vm0, 1.0, %v3249_v27 }
 0x3ac   : > { %3040 = vrot.lane.b32.xlu0 %v3039_v50, %s3250_s12  ;;  %1643 = vrot.lane.b32.xlu1 %v1559_v12, %s3250_s12  ;;  %vm1961_vm15 = vmand %vm1929_vm9, %vm1213_vm13  ;;  %v2660_v7 = vsel %vm1213_vm13, 1.0, %v3249_v27 }
 0x3ad   : > { %v4361_v54 = vpop.xlane.xlu1 %1501  ;;  %v2628_v13 = vsel %vm1961_vm15, 1.0, %v3249_v27  ;;  %v1560_v46 = vsel %vm1205_vm3, %v1528_v44, 0.0  ;;  %v3059_v33 = vpack.i.bf16 %v2630_v14, %v2660_v7  ;;  %vm1699_vm3 = vcmask 7168  }
 0x3ae   : > { %v3054_v43 = vpack.i.bf16 %v2628_v13, %v2658_v56 }
 0x3af   : > { %v1077_v60 = vpop.xlane.xlu0 %1076 }
 0x3b0   : > { %3224 = vlog2.f32 %v1077_v60  ;;  %3045 = vrot.lane.b32.xlu0 %v3044_v35, %s3250_s12  ;;  %1649 = vrot.lane.b32.xlu1 %v1562_v58, %s3250_s12 }
 0x3b1   : > { %v1079_v52 = vpop.xlane.xlu1 %1078 }
 0x3b2   : > { %3226 = vlog2.f32 %v1079_v52 }
 0x3b3   : > { %v1073_v30 = vpop.xlane.xlu0 %1072 }
 0x3b4   : > { %3228 = vlog2.f32 %v1073_v30  ;;  %1645 = vrot.lane.b32.xlu1 %v1560_v46, %s3250_s12  ;;  %3050 = vrot.lane.b32.xlu0 %v3049_v57, %s3250_s12 }
 0x3b5   : > { %v1075_v48 = vpop.xlane.xlu1 %1074 }
 0x3b6   : > { %3230 = vlog2.f32 %v1075_v48 }
 0x3b7   : > { %v1085_v62 = vpop.xlane.xlu0 %1084 }
 0x3b8   : > { %3055 = vrot.lane.b32.xlu0 %v3054_v43, %s3250_s12  ;;  %3232 = vlog2.f32 %v1085_v62 }
 0x3b9   : > { %v1087_v49 = vpop.xlane.xlu1 %1086 }
 0x3ba   : > { %v3225_v1 = vpop.eup %3224 }
 0x3bb   : > { %v1141_v29 = vmul.f32 0.6931472, %v3225_v1  ;;  %v1081_v51 = vpop.xlane.xlu0 %1080 }
 0x3bc   : > { %v3227_v53 = vpop.eup %3226  ;;  %3060 = vrot.lane.b32.xlu0 %v3059_v33, %s3250_s12  ;;  %3234 = vlog2.f32 %v1081_v51 }
 0x3bd   : > { %v1533_v37 = vsub.f32 %v1141_v29, %v4243_v55  ;;  %v1083_v2 = vpop.xlane.xlu1 %1082  ;;  %v1143_v63 = vmul.f32 0.6931472, %v3227_v53 }
 0x3be   : > { %v3229_v16 = vpop.eup %3228  ;;  %3236 = vlog2.f32 %v1083_v2 }
 0x3bf   : > { %v1137_v47 = vmul.f32 0.6931472, %v3229_v16  ;;  %v2916_v59 = vpop.permute.xlu0 %2915  ;;  %v1565_v19 = vsel %vm1210_vm10, %v1533_v37, 0.0  ;;  %v1534_v31 = vsub.f32 %v1143_v63, %v4251_v9  ;;  %3238 = vlog2.f32 %v1087_v49 }
 0x3c0   : > { %v3231_v61 = vpop.eup %3230  ;;  %v2917_v39 = vunpack.i.l.bf16 %v2916_v59  ;;  %1655 = vrot.lane.b32.xlu1 %v1565_v19, %s3250_s12  ;;  %2384 = vrot.lane.b32.xlu0 %v2661_v20, %s3250_s12  ;;  %v2918_v35 = vunpack.i.h.bf16 %v2916_v59 }
 0x3c1   : > { %v1531_v55 = vsub.f32 %v1137_v47, %v4272_v40  ;;  %v2911_v3 = vpop.permute.xlu1 %2910  ;;  %v1139_v5 = vmul.f32 0.6931472, %v3231_v61  ;;  %v1566_v24 = vsel %vm1211_vm7, %v1534_v31, 0.0 }
 0x3c2   : > { %v2913_v8 = vunpack.i.h.bf16 %v2911_v3  ;;  %v3233_v26 = vpop.eup %3232  ;;  %v2421_v23 = vsel %vm1699_vm3, %v2917_v39, 0.0  ;;  %v2912_v34 = vunpack.i.l.bf16 %v2911_v3  ;;  %v2161_v7 = vsel %vm1699_vm3, %v2918_v35, 0.0 }
 0x3c3   : > { %v2926_v25 = vpop.permute.xlu0 %2925  ;;  %v1563_v28 = vsel %vm1208_vm1, %v1531_v55, 0.0  ;;  %v1149_v38 = vmul.f32 0.6931472, %v3233_v26  ;;  %v1532_v9 = vsub.f32 %v1139_v5, %v4283_v32 }
 0x3c4   : > { %v2420_v22 = vsel %vm1699_vm3, %v2913_v8, 0.0  ;;  %1651 = vrot.lane.b32.xlu1 %v1563_v28, %s3250_s12  ;;  %v2159_v32 = vsel %vm1699_vm3, %v2912_v34, 0.0  ;;  %v2928_v29 = vunpack.i.h.bf16 %v2926_v25  ;;  %v2927_v0 = vunpack.i.l.bf16 %v2926_v25 }
 0x3c5   : > { %v2422_v40 = vadd.f32 %v2421_v23, %v2420_v22  ;;  %v2921_v50 = vpop.permute.xlu1 %2920  ;;  %v1537_v57 = vsub.f32 %v1149_v38, %v4324_v11  ;;  %v1564_v48 = vsel %vm1209_vm8, %v1532_v9, 0.0 }
 0x3c6   : > { %v2923_v10 = vunpack.i.h.bf16 %v2921_v50  ;;  %v2922_v36 = vunpack.i.l.bf16 %v2921_v50  ;;  %v3235_v18 = vpop.eup %3234  ;;  %v2167_v8 = vsel %vm1699_vm3, %v2928_v29, 0.0  ;;  %v2427_v26 = vsel %vm1699_vm3, %v2927_v0, 0.0 }
 0x3c7   : > { %v2931_v12 = vpop.permute.xlu0 %2930  ;;  %v1145_v4 = vmul.f32 0.6931472, %v3235_v18  ;;  %v1569_v53 = vsel %vm1214_vm11, %v1537_v57, 0.0 }
 0x3c8   : > { %v2157_v44 = vsel %vm1699_vm3, %v2923_v10, 0.0  ;;  %v2156_v21 = vsel %vm1699_vm3, %v2922_v36, 0.0  ;;  %v2932_v60 = vunpack.i.l.bf16 %v2931_v12  ;;  %1657 = vrot.lane.b32.xlu1 %v1566_v24, %s3250_s12  ;;  %v3237_v43 = vpop.eup %3236  ;;  %v2933_v14 = vunpack.i.h.bf16 %v2931_v12 }
 0x3c9   : > { %v2158_v58 = vadd.f32 %v2157_v44, %v2156_v21  ;;  %v4414_v52 = vpop.permute.xlu1 %1609  ;;  %v3239_v49 = vpop.eup %3238  ;;  %v1535_v1 = vsub.f32 %v1145_v4, %v4336_v41  ;;  %v1147_v33 = vmul.f32 0.6931472, %v3237_v43 }
 0x3ca   : > { %v2423_v56 = vsel %vm1699_vm3, %v2932_v60, 0.0  ;;  %v2163_v37 = vsel %vm1699_vm3, %v2933_v14, 0.0  ;;  %v1151_v47 = vmul.f32 0.6931472, %v3239_v49 }
 0x3cb   : > { %v2160_v13 = vadd.f32 %v2159_v32, %v2158_v58  ;;  %v2424_v30 = vadd.f32 %v2423_v56, %v2422_v40  ;;  %v4419_v46 = vpop.permute.xlu0 %2935  ;;  %v1536_v42 = vsub.f32 %v1147_v33, %v4361_v54  ;;  %v1567_v3 = vsel %vm1212_vm5, %v1535_v1, 0.0 }
 0x3cc   : > { %1653 = vrot.lane.b32.xlu1 %v1564_v48, %s3250_s12  ;;  %v2937_v59 = vunpack.i.l.bf16 %v4419_v46  ;;  %v1538_v54 = vsub.f32 %v1151_v47, %v4352_v15 }
 0x3cd   : > { %v2162_v62 = vadd.f32 %v2161_v7, %v2160_v13  ;;  %v4425_v11 = vpop.permute.xlu1 %1605  ;;  %v1568_v40 = vsel %vm1213_vm13, %v1536_v42, 0.0  ;;  %v2938_v7 = vunpack.i.h.bf16 %v4419_v46 }
 0x3ce   : > { %v2429_v28 = vsel %vm1699_vm3, %v2937_v59, 0.0  ;;  %v1570_v36 = vsel %vm1215_vm0, %v1538_v54, 0.0  ;;  %v1701_v1 = vsel %vm1699_vm3, %v4425_v11, 0.0  ;;  %v1705_v11 = vsel %vm1699_vm3, %v4414_v52, 0.0 }
 0x3cf   : > { %v2941_v51 = vpop.permute.xlu0 %2940  ;;  %v2164_v16 = vadd.f32 %v2163_v37, %v2162_v62  ;;  %v2169_v0 = vsel %vm1699_vm3, %v2938_v7, 0.0 }
 0x3d0   : > { %v2943_v2 = vunpack.i.h.bf16 %v2941_v51  ;;  %v2942_v20 = vunpack.i.l.bf16 %v2941_v51  ;;  %1663 = vrot.lane.b32.xlu1 %v1569_v53, %s3250_s12 }
 0x3d1   : > { %v4432_v63 = vpop.permute.xlu1 %1615 }
 0x3d2   : > { %v2165_v41 = vsel %vm1699_vm3, %v2943_v2, 0.0  ;;  %v2425_v19 = vsel %vm1699_vm3, %v2942_v20, 0.0 }
 0x3d3   : > { %v2166_v61 = vadd.f32 %v2165_v41, %v2164_v16  ;;  %v2426_v39 = vadd.f32 %v2425_v19, %v2424_v30  ;;  %v4438_v55 = vpop.permute.xlu0 %2945 }
 0x3d4   : > { %1659 = vrot.lane.b32.xlu1 %v1567_v3, %s3250_s12  ;;  %v2947_v12 = vunpack.i.l.bf16 %v4438_v55  ;;  %v2948_v3 = vunpack.i.h.bf16 %v4438_v55  ;;  %v1711_v55 = vsel %vm1699_vm3, %v4432_v63, 0.0 }
 0x3d5   : > { %v2168_v31 = vadd.f32 %v2167_v8, %v2166_v61  ;;  %v2428_v5 = vadd.f32 %v2427_v26, %v2426_v39  ;;  %v1612_v25 = vpop.permute.xlu1 %1611 }
 0x3d6   : > { %v2435_v58 = vsel %vm1699_vm3, %v2947_v12, 0.0  ;;  %v1707_v8 = vsel %vm1699_vm3, %v1612_v25, 0.0  ;;  %v2175_v25 = vsel %vm1699_vm3, %v2948_v3, 0.0 }
 0x3d7   : > { %v2951_v23 = vpop.permute.xlu0 %2950  ;;  %v2430_v22 = vadd.f32 %v2429_v28, %v2428_v5  ;;  %v2170_v20 = vadd.f32 %v2169_v0, %v2168_v31 }
 0x3d8   : > { %v2952_v6 = vunpack.i.l.bf16 %v2951_v23  ;;  %1661 = vrot.lane.b32.xlu1 %v1568_v40, %s3250_s12  ;;  %v2953_v14 = vunpack.i.h.bf16 %v2951_v23 }
 0x3d9   : > { %v4450_v50 = vpop.permute.xlu1 %1617 }
 0x3da   : > { %v2431_v38 = vsel %vm1699_vm3, %v2952_v6, 0.0  ;;  %v2171_v37 = vsel %vm1699_vm3, %v2953_v14, 0.0 }
 0x3db   : > { %v2432_v34 = vadd.f32 %v2431_v38, %v2430_v22  ;;  %v4453_v10 = vpop.permute.xlu0 %2955  ;;  %v2172_v42 = vadd.f32 %v2171_v37, %v2170_v20 }
 0x3dc   : > { %1665 = vrot.lane.b32.xlu1 %v1570_v36, %s3250_s12  ;;  %v2957_v35 = vunpack.i.l.bf16 %v4453_v10  ;;  %v2958_v38 = vunpack.i.h.bf16 %v4453_v10 }
 0x3dd   : > { %v1614_v15 = vpop.permute.xlu1 %1613 }
 0x3de   : > { %v2437_v27 = vsel %vm1699_vm3, %v2957_v35, 0.0  ;;  %v1709_v23 = vsel %vm1699_vm3, %v1614_v15, 0.0  ;;  %v1713_v15 = vsel %vm1699_vm3, %v4450_v50, 0.0 }
 0x3df   : > { %v2961_v9 = vpop.permute.xlu0 %2960 }
 0x3e0   : > { %v2962_v24 = vunpack.i.l.bf16 %v2961_v9  ;;  %2386 = vrot.lane.b32.xlu1 %v2662_v17, %s3250_s12  ;;  %v2963_v33 = vunpack.i.h.bf16 %v2961_v9 }
 0x3e1   : > { %v4463_v18 = vpop.permute.xlu1 %1623 }
 0x3e2   : > { %v2433_v44 = vsel %vm1699_vm3, %v2962_v24, 0.0  ;;  %v2173_v59 = vsel %vm1699_vm3, %v2963_v33, 0.0  ;;  %v1719_v33 = vsel %vm1699_vm3, %v4463_v18, 0.0 }
 0x3e3   : > { %v2434_v21 = vadd.f32 %v2433_v44, %v2432_v34  ;;  %v4467_v60 = vpop.permute.xlu0 %2965  ;;  %v2174_v5 = vadd.f32 %v2173_v59, %v2172_v42  ;;  %v2177_v44 = vsel %vm1699_vm3, %v2958_v38, 0.0 }
 0x3e4   : > { %v2967_v41 = vunpack.i.l.bf16 %v4467_v60 }
 0x3e5   : > { %v2436_v57 = vadd.f32 %v2435_v58, %v2434_v21  ;;  %v1620_v45 = vpop.permute.xlu1 %1619  ;;  %v2176_v36 = vadd.f32 %v2175_v25, %v2174_v5 }
 0x3e6   : > { %v2443_v22 = vsel %vm1699_vm3, %v2967_v41, 0.0  ;;  %v1715_v63 = vsel %vm1699_vm3, %v1620_v45, 0.0 }
 0x3e7   : > { %v2971_v32 = vpop.permute.xlu0 %2970  ;;  %v2438_v56 = vadd.f32 %v2437_v27, %v2436_v57  ;;  %v2178_v58 = vadd.f32 %v2177_v44, %v2176_v36 }
 0x3e8   : > { %v2972_v62 = vunpack.i.l.bf16 %v2971_v32  ;;  %v2973_v34 = vunpack.i.h.bf16 %v2971_v32 }
 0x3e9   : > { %v4471_v4 = vpop.permute.xlu1 %1625 }
 0x3ea   : > { %v2439_v2 = vsel %vm1699_vm3, %v2972_v62, 0.0  ;;  %v2179_v21 = vsel %vm1699_vm3, %v2973_v34, 0.0 }
 0x3eb   : > { %v1608_v13 = vpop.permute.xlu0 %1607  ;;  %v2440_v61 = vadd.f32 %v2439_v2, %v2438_v56  ;;  %v2180_v32 = vadd.f32 %v2179_v21, %v2178_v58  ;;  %v2968_v56 = vunpack.i.h.bf16 %v4467_v60 }
 0x3ec   : > { %v1703_v46 = vsel %vm1699_vm3, %v1608_v13, 0.0 }
 0x3ed   : > { %v1622_v30 = vpop.permute.xlu1 %1621 }
 0x3ee   : > { %v1717_v50 = vsel %vm1699_vm3, %v1622_v30, 0.0 }
 0x3ef   : > { %v4473_v48 = vpop.permute.xlu0 %2975 }
 0x3f0   : > { %v2978_v45 = vunpack.i.h.bf16 %v4473_v48 }
 0x3f1   : > { %v4475_v43 = vpop.permute.xlu1 %1631 }
 0x3f2   : > { %v2185_v30 = vsel %vm1699_vm3, %v2978_v45, 0.0  ;;  %v1727_v38 = vsel %vm1699_vm3, %v4475_v43, 0.0 }
 0x3f3   : > { %v1604_v49 = vpop.permute.xlu0 %1603 }
 0x3f4   : > { %v1700_v29 = vsel %vm1699_vm3, %v1604_v49, 0.0  ;;  %v2183_v49 = vsel %vm1699_vm3, %v2968_v56, 0.0 }
 0x3f5   : > { %v1702_v51 = vadd.f32 %v1701_v1, %v1700_v29  ;;  %v4481_v53 = vpop.permute.xlu1 %1627 }
 0x3f7   : > { %v1704_v16 = vadd.f32 %v1703_v46, %v1702_v51  ;;  %v2981_v47 = vpop.permute.xlu0 %2980  ;;  %v1721_v46 = vsel %vm1699_vm3, %v4471_v4, 0.0 }
 0x3f8   : > { %v2982_v19 = vunpack.i.l.bf16 %v2981_v47  ;;  %v2983_v12 = vunpack.i.h.bf16 %v2981_v47 }
 0x3f9   : > { %v1706_v39 = vadd.f32 %v1705_v11, %v1704_v16  ;;  %v4494_v31 = vpop.permute.xlu1 %1633 }
 0x3fa   : > { %v2441_v26 = vsel %vm1699_vm3, %v2982_v19, 0.0  ;;  %v2181_v27 = vsel %vm1699_vm3, %v2983_v12, 0.0  ;;  %v1723_v19 = vsel %vm1699_vm3, %v4481_v53, 0.0  ;;  %v1729_v43 = vsel %vm1699_vm3, %v4494_v31, 0.0 }
 0x3fb   : > { %v1708_v28 = vadd.f32 %v1707_v8, %v1706_v39  ;;  %v2442_v54 = vadd.f32 %v2441_v26, %v2440_v61  ;;  %v4496_v52 = vpop.permute.xlu0 %2985  ;;  %v2182_v7 = vadd.f32 %v2181_v27, %v2180_v32 }
 0x3fc   : > { %v2988_v59 = vunpack.i.h.bf16 %v4496_v52  ;;  %v2987_v56 = vunpack.i.l.bf16 %v4496_v52 }
 0x3fd   : > { %v1710_v40 = vadd.f32 %v1709_v23, %v1708_v28  ;;  %v4500_v6 = vadd.f32 %v2443_v22, %v2442_v54  ;;  %v1630_v24 = vpop.permute.xlu1 %1629  ;;  %v2184_v29 = vadd.f32 %v2183_v49, %v2182_v7 }
 0x3fe   : > { %v2191_v4 = vsel %vm1699_vm3, %v2988_v59, 0.0  ;;  %v1725_v26 = vsel %vm1699_vm3, %v1630_v24, 0.0 }
 0x3ff   : > { %v1712_v17 = vadd.f32 %v1711_v55, %v1710_v40  ;;  %v4506_v9 = vpop.permute.xlu0 %2990  ;;  %v2186_v20 = vadd.f32 %v2185_v30, %v2184_v29  ;;  %v2977_v40 = vunpack.i.l.bf16 %v4473_v48 }
 0x400   : > { %v2993_v1 = vunpack.i.h.bf16 %v4506_v9  ;;  %v2992_v53 = vunpack.i.l.bf16 %v4506_v9 }
 0x401   : > { %v1714_v35 = vadd.f32 %v1713_v15, %v1712_v17  ;;  %v2445_v48 = vsel %vm1699_vm3, %v2977_v40, 0.0 }
 0x402   : > { %v4517_v13 = vpop.permute.xlu1 %1639  ;;  %v2187_v2 = vsel %vm1699_vm3, %v2993_v1, 0.0  ;;  %v2447_v9 = vsel %vm1699_vm3, %v2992_v53, 0.0  ;;  %v2446_v44 = vadd.f32 %v2445_v48, %v4500_v6 }
 0x403   : > { %v4513_v57 = vpop.permute.xlu0 %2995  ;;  %v1716_v10 = vadd.f32 %v1715_v63, %v1714_v35  ;;  %v2188_v18 = vadd.f32 %v2187_v2, %v2186_v20 }
 0x404   : > { %v2998_v3 = vunpack.i.h.bf16 %v4513_v57  ;;  %v2448_v27 = vadd.f32 %v2447_v9, %v2446_v44  ;;  %v2997_v29 = vunpack.i.l.bf16 %v4513_v57 }
 0x405   : > { %v1718_v62 = vadd.f32 %v1717_v50, %v1716_v10 }
 0x406   : > { %v1636_v0 = vpop.permute.xlu1 %1635  ;;  %v2193_v55 = vsel %vm1699_vm3, %v2998_v3, 0.0  ;;  %v2453_v59 = vsel %vm1699_vm3, %v2997_v29, 0.0 }
 0x407   : > { %v3001_v14 = vpop.permute.xlu0 %3000  ;;  %v1720_v60 = vadd.f32 %v1719_v33, %v1718_v62  ;;  %v1731_v49 = vsel %vm1699_vm3, %v1636_v0, 0.0  ;;  %v2451_v33 = vsel %vm1699_vm3, %v2987_v56, 0.0 }
 0x408   : > { %v3003_v37 = vunpack.i.h.bf16 %v3001_v14  ;;  %v3002_v34 = vunpack.i.l.bf16 %v3001_v14 }
 0x409   : > { %v1722_v47 = vadd.f32 %v1721_v46, %v1720_v60 }
 0x40a   : > { %v2189_v11 = vsel %vm1699_vm3, %v3003_v37, 0.0  ;;  %v4535_v41 = vpop.permute.xlu1 %1641  ;;  %v2449_v63 = vsel %vm1699_vm3, %v3002_v34, 0.0 }
 0x40b   : > { %v4525_v51 = vpop.permute.xlu0 %3005  ;;  %v2190_v42 = vadd.f32 %v2189_v11, %v2188_v18  ;;  %v1724_v39 = vadd.f32 %v1723_v19, %v1722_v47  ;;  %v2450_v50 = vadd.f32 %v2449_v63, %v2448_v27 }
 0x40c   : > { %v3008_v21 = vunpack.i.h.bf16 %v4525_v51 }
 0x40d   : > { %v2192_v5 = vadd.f32 %v2191_v4, %v2190_v42  ;;  %v1726_v54 = vadd.f32 %v1725_v26, %v1724_v39  ;;  %v2452_v60 = vadd.f32 %v2451_v33, %v2450_v50  ;;  %v1735_v4 = vsel %vm1699_vm3, %v4517_v13, 0.0 }
 0x40e   : > { %v1638_v23 = vpop.permute.xlu1 %1637  ;;  %v2199_v7 = vsel %vm1699_vm3, %v3008_v21, 0.0 }
 0x40f   : > { %v4531_v16 = vpop.permute.xlu0 %3010  ;;  %v2194_v36 = vadd.f32 %v2193_v55, %v2192_v5  ;;  %v1728_v15 = vadd.f32 %v1727_v38, %v1726_v54  ;;  %v1733_v2 = vsel %vm1699_vm3, %v1638_v23, 0.0  ;;  %v2454_v42 = vadd.f32 %v2453_v59, %v2452_v60 }
 0x410   : > { %v3013_v8 = vunpack.i.h.bf16 %v4531_v16  ;;  %v3012_v52 = vunpack.i.l.bf16 %v4531_v16  ;;  %v3007_v54 = vunpack.i.l.bf16 %v4525_v51  ;;  %v1737_v55 = vsel %vm1699_vm3, %v4535_v41, 0.0 }
 0x411   : > { %v1730_v32 = vadd.f32 %v1729_v43, %v1728_v15 }
 0x412   : > { %v2195_v25 = vsel %vm1699_vm3, %v3013_v8, 0.0  ;;  %v2455_v19 = vsel %vm1699_vm3, %v3012_v52, 0.0  ;;  %v2459_v15 = vsel %vm1699_vm3, %v3007_v54, 0.0 }
 0x413   : > { %v4539_v61 = vpop.permute.xlu0 %3015  ;;  %v2196_v35 = vadd.f32 %v2195_v25, %v2194_v36  ;;  %v1732_v1 = vadd.f32 %v1731_v49, %v1730_v32 }
 0x414   : > { %v3018_v14 = vunpack.i.h.bf16 %v4539_v61 }
 0x415   : > { %v1734_v47 = vadd.f32 %v1733_v2, %v1732_v1 }
 0x416   : > { %v2201_v37 = vsel %vm1699_vm3, %v3018_v14, 0.0 }
 0x417   : > { %v3021_v28 = vpop.permute.xlu0 %3020  ;;  %v1736_v5 = vadd.f32 %v1735_v4, %v1734_v47 }
 0x418   : > { %v3023_v22 = vunpack.i.h.bf16 %v3021_v28  ;;  %v3022_v46 = vunpack.i.l.bf16 %v3021_v28  ;;  %v2456_v28 = vadd.f32 %v2455_v19, %v2454_v42 }
 0x419   : > { %v1738_v34 = vadd.f32 %v1737_v55, %v1736_v5 }
 0x41a   : > { %v2197_v12 = vsel %vm1699_vm3, %v3023_v22, 0.0  ;;  %v4554_v24 = vpop.permute.xlu1 %1647  ;;  %v2457_v3 = vsel %vm1699_vm3, %v3022_v46, 0.0 }
 0x41b   : > { %v4551_v17 = vpop.permute.xlu0 %3025  ;;  %v2198_v58 = vadd.f32 %v2197_v12, %v2196_v35  ;;  %v2458_v23 = vadd.f32 %v2457_v3, %v2456_v28  ;;  %v3017_v12 = vunpack.i.l.bf16 %v4539_v61 }
 0x41c   : > { %v3028_v16 = vunpack.i.h.bf16 %v4551_v17 }
 0x41d   : > { %v2200_v31 = vadd.f32 %v2199_v7, %v2198_v58  ;;  %v2460_v9 = vadd.f32 %v2459_v15, %v2458_v23  ;;  %v2461_v61 = vsel %vm1699_vm3, %v3017_v12, 0.0 }
 0x41e   : > { %v1644_v6 = vpop.permute.xlu1 %1643  ;;  %v2207_v22 = vsel %vm1699_vm3, %v3028_v16, 0.0 }
 0x41f   : > { %v4563_v10 = vpop.permute.xlu0 %3030  ;;  %v2202_v20 = vadd.f32 %v2201_v37, %v2200_v31  ;;  %v1739_v13 = vsel %vm1699_vm3, %v1644_v6, 0.0  ;;  %v2462_v7 = vadd.f32 %v2461_v61, %v2460_v9  ;;  %v3027_v37 = vunpack.i.l.bf16 %v4551_v17 }
 0x420   : > { %v3033_v62 = vunpack.i.h.bf16 %v4563_v10  ;;  %v3032_v51 = vunpack.i.l.bf16 %v4563_v10  ;;  %v1740_v35 = vadd.f32 %v1739_v13, %v1738_v34 }
 0x421   : > { %v2467_v59 = vsel %vm1699_vm3, %v3027_v37, 0.0 }
 0x422   : > { %v2203_v30 = vsel %vm1699_vm3, %v3033_v62, 0.0  ;;  %v1650_v11 = vpop.permute.xlu1 %1649  ;;  %v2463_v10 = vsel %vm1699_vm3, %v3032_v51, 0.0  ;;  %v1743_v62 = vsel %vm1699_vm3, %v4554_v24, 0.0 }
 0x423   : > { %v4570_v45 = vpop.permute.xlu0 %3035  ;;  %v2204_v57 = vadd.f32 %v2203_v30, %v2202_v20  ;;  %v2464_v33 = vadd.f32 %v2463_v10, %v2462_v7 }
 0x424   : > { %v3038_v40 = vunpack.i.h.bf16 %v4570_v45  ;;  %v3037_v19 = vunpack.i.l.bf16 %v4570_v45 }
 0x426   : > { %v1646_v53 = vpop.permute.xlu1 %1645  ;;  %v2209_v44 = vsel %vm1699_vm3, %v3038_v40, 0.0 }
 0x427   : > { %v3041_v0 = vpop.permute.xlu0 %3040  ;;  %v1741_v48 = vsel %vm1699_vm3, %v1646_v53, 0.0 }
 0x428   : > { %v3043_v18 = vunpack.i.h.bf16 %v3041_v0  ;;  %v3042_v43 = vunpack.i.l.bf16 %v3041_v0  ;;  %v1742_v27 = vadd.f32 %v1741_v48, %v1740_v35  ;;  %v1745_v0 = vsel %vm1699_vm3, %v1650_v11, 0.0 }
 0x42a   : > { %v2205_v39 = vsel %vm1699_vm3, %v3043_v18, 0.0  ;;  %v2465_v49 = vsel %vm1699_vm3, %v3042_v43, 0.0  ;;  %v1744_v29 = vadd.f32 %v1743_v62, %v1742_v27 }
 0x42b   : > { %v2206_v8 = vadd.f32 %v2205_v39, %v2204_v57  ;;  %v4585_v26 = vpop.permute.xlu0 %3045  ;;  %v2466_v2 = vadd.f32 %v2465_v49, %v2464_v33 }
 0x42c   : > { %v3048_v32 = vunpack.i.h.bf16 %v4585_v26  ;;  %v1746_v18 = vadd.f32 %v1745_v0, %v1744_v29  ;;  %v3047_v40 = vunpack.i.l.bf16 %v4585_v26 }
 0x42d   : > { %v2208_v25 = vadd.f32 %v2207_v22, %v2206_v8  ;;  %v2468_v42 = vadd.f32 %v2467_v59, %v2466_v2  ;;  %v2469_v8 = vsel %vm1699_vm3, %v3037_v19, 0.0  ;;  %v4767_v59 = vld [vmem:[#allocation32_spill] sm:$0xff] }
 0x42e   : > { %v2215_v52 = vsel %vm1699_vm3, %v3048_v32, 0.0  ;;  %vm2492_vm10 = vcmp.eq.s32.totalorder %v4767_v59, 0  ;;  %vm2495_vm1 = vcmp.eq.s32.totalorder %v4767_v59, 1  ;;  %vm2499_vm7 = vcmp.eq.s32.totalorder %v4767_v59, 2 }
 0x42f   : > { %v3051_v38 = vpop.permute.xlu0 %3050  ;;  %v2210_v63 = vadd.f32 %v2209_v44, %v2208_v25  ;;  %v2470_v5 = vadd.f32 %v2469_v8, %v2468_v42 }
 0x430   : > { %v3053_v36 = vunpack.i.h.bf16 %v3051_v38  ;;  %v3052_v57 = vunpack.i.l.bf16 %v3051_v38 }
 0x432   : > { %v2211_v41 = vsel %vm1699_vm3, %v3053_v36, 0.0  ;;  %v1656_v21 = vpop.permute.xlu1 %1655  ;;  %v2471_v11 = vsel %vm1699_vm3, %v3052_v57, 0.0  ;;  %v2475_v36 = vsel %vm1699_vm3, %v3047_v40, 0.0 }
 0x433   : > { %v3056_v58 = vpop.permute.xlu0 %3055  ;;  %v2212_v50 = vadd.f32 %v2211_v41, %v2210_v63  ;;  %v1751_v54 = vsel %vm1699_vm3, %v1656_v21, 0.0  ;;  %v2472_v45 = vadd.f32 %v2471_v11, %v2470_v5 }
 0x434   : > { %v3058_v56 = vunpack.i.h.bf16 %v3056_v58  ;;  %v3057_v39 = vunpack.i.l.bf16 %v3056_v58 }
 0x436   : > { %v2213_v14 = vsel %vm1699_vm3, %v3058_v56, 0.0  ;;  %v1652_v6 = vpop.permute.xlu1 %1651  ;;  %v2473_v23 = vsel %vm1699_vm3, %v3057_v39, 0.0 }
 0x437   : > { %v2214_v31 = vadd.f32 %v2213_v14, %v2212_v50  ;;  %v3061_v1 = vpop.permute.xlu0 %3060  ;;  %v1747_v24 = vsel %vm1699_vm3, %v1652_v6, 0.0  ;;  %v2474_v53 = vadd.f32 %v2473_v23, %v2472_v45 }
 0x438   : > { %v3063_v60 = vunpack.i.h.bf16 %v3061_v1  ;;  %v1748_v16 = vadd.f32 %v1747_v24, %v1746_v18  ;;  %v3062_v13 = vunpack.i.l.bf16 %v3061_v1 }
 0x439   : > { %v2216_v30 = vadd.f32 %v2215_v52, %v2214_v31  ;;  %v2476_v15 = vadd.f32 %v2475_v36, %v2474_v53 }
 0x43a   : > { %v2217_v46 = vsel %vm1699_vm3, %v3063_v60, 0.0  ;;  %v1658_v20 = vpop.permute.xlu1 %1657  ;;  %v2477_v48 = vsel %vm1699_vm3, %v3062_v13, 0.0 }
 0x43b   : > { %v2218_v47 = vadd.f32 %v2217_v46, %v2216_v30  ;;  %v1753_v25 = vsel %vm1699_vm3, %v1658_v20, 0.0  ;;  %v2385_v35 = vpop.permute.xlu0 %2384  ;;  %v2478_v41 = vadd.f32 %v2477_v48, %v2476_v15 }
 0x43c   : > { %v2479_v63 = vsel %vm1699_vm3, %v2385_v35, 0.0 }
 0x43d   : > { %2219 = vadd.xlane.f32.xlu1 %v2218_v47  ;;  %v2480_v32 = vadd.f32 %v2479_v63, %v2478_v41 }
 0x43e   : > { %v1654_v17 = vpop.permute.xlu1 %1653 }
 0x43f   : > { %v1749_v4 = vsel %vm1699_vm3, %v1654_v17, 0.0 }
 0x440   : > { %v1750_v3 = vadd.f32 %v1749_v4, %v1748_v16 }
 0x442   : > { %v1664_v28 = vpop.permute.xlu1 %1663  ;;  %v1752_v22 = vadd.f32 %v1751_v54, %v1750_v3 }
 0x443   : > { %v1759_v26 = vsel %vm1699_vm3, %v1664_v28, 0.0 }
 0x444   : > { %v1754_v34 = vadd.f32 %v1753_v25, %v1752_v22 }
 0x446   : > { %v1660_v55 = vpop.permute.xlu1 %1659 }
 0x447   : > { %v1755_v38 = vsel %vm1699_vm3, %v1660_v55, 0.0 }
 0x448   : > { %v1756_v12 = vadd.f32 %v1755_v38, %v1754_v34 }
 0x44a   : > { %v1662_v51 = vpop.permute.xlu1 %1661 }
 0x44b   : > { %v1757_v9 = vsel %vm1699_vm3, %v1662_v51, 0.0 }
 0x44c   : > { %v1758_v44 = vadd.f32 %v1757_v9, %v1756_v12 }
 0x44e   : > { %v1666_v21 = vpop.permute.xlu1 %1665  ;;  %v1760_v43 = vadd.f32 %v1759_v26, %v1758_v44 }
 0x44f   : > { %v1761_v58 = vsel %vm1699_vm3, %v1666_v21, 0.0 }
 0x450   : > { %v1762_v27 = vadd.f32 %v1761_v58, %v1760_v43 }
 0x452   : > { %v2387_v56 = vpop.permute.xlu1 %2386  ;;  %1763 = vadd.xlane.f32.xlu0 %v1762_v27 }
 0x453   : > { %v2481_v61 = vsel %vm1699_vm3, %v2387_v56, 0.0 }
 0x454   : > { %v2482_v10 = vadd.f32 %v2481_v61, %v2480_v32 }
 0x456   : > { %2483 = vadd.xlane.f32.xlu0 %v2482_v10 }
 0x4ca   : > { %v2220_v50 = vpop.xlane.xlu1 %2219 }
 0x4cb   : > { %v2221_v7 = vrot.slane %v2220_v50, 4 }
 0x4cd   : > { %v2222_v14 = vadd.f32 %v2221_v7, %v2220_v50 }
 0x4cf   : > { %v2223_v6 = vrot.slane %v2222_v14, 2 }
 0x4d1   : > { %v2224_v1 = vadd.f32 %v2223_v6, %v2222_v14 }
 0x4d3   : > { %v2225_v30 = vrot.slane %v2224_v1, 1 }
 0x4d5   : > { %v2226_v24 = vadd.f32 %v2225_v30, %v2224_v1 }
 0x4df   : > { %v1764_v62 = vpop.xlane.xlu0 %1763 }
 0x4e0   : > { %v1765_v49 = vrot.slane %v1764_v62, 4 }
 0x4e2   : > { %v1766_v31 = vadd.f32 %v1765_v49, %v1764_v62 }
 0x4e3   : > { %v2484_v33 = vpop.xlane.xlu0 %2483 }
 0x4e4   : > { %v1767_v29 = vrot.slane %v1766_v31, 2  ;;  %v2485_v52 = vrot.slane %v2484_v33, 4 }
 0x4e6   : > { %v2486_v60 = vadd.f32 %v2485_v52, %v2484_v33  ;;  %v1768_v37 = vadd.f32 %v1767_v29, %v1766_v31 }
 0x4e8   : > { %v2487_v2 = vrot.slane %v2486_v60, 2  ;;  %v1769_v46 = vrot.slane %v1768_v37, 1 }
 0x4ea   : > { %v2488_v20 = vadd.f32 %v2487_v2, %v2486_v60  ;;  %v1770_v0 = vadd.f32 %v1769_v46, %v1768_v37 }
 0x4ec   : > { %2810 = vpush %v1770_v0  ;;  %v2489_v47 = vrot.slane %v2488_v20, 1 }
 0x4ed   : > { %2812 = vpush %v2226_v24 }
 0x4ee   : > { %v2490_v18 = vadd.f32 %v2489_v47, %v2488_v20 }
 0x4f0   : > { %2814 = vpush %v2490_v18 }
 0x51d   : > { %s2811_s13 = spop %2810 }
 0x51e   : > { %v2493_v19 = vstv %s2811_s13  ;;  %s2813_s14 = spop %2812 }
 0x51f   : > { %v2494_v57 = vsel %vm2492_vm10, %v2493_v19, 0.0  ;;  %v2496_v42 = vstv %s2813_s14 }
 0x520   : > { %v2497_v16 = vsel %vm2495_vm1, %v2496_v42, 0.0 }
 0x521   : > { %s2815_s16 = spop %2814  ;;  %v2498_v17 = vadd.f32 %v2497_v16, %v2494_v57 }
 0x522   : > { %v2500_v39 = vstv %s2815_s16 }
 0x523   : > { %v2501_v4 = vsel %vm2499_vm7, %v2500_v39, 0.0 }
 0x524   : > { %v2502_v3 = vadd.f32 %v2501_v4, %v2498_v17 }
 0x526   : > { %2503 = vst [vmem:[%s222_s21] sm:$0xff] %v2502_v3 }
 0x527 PF: > { %s15_s18 = sadd.s32 1, %s3246_s18  }
 0x528   : > { %p12_p4 = scmp.ge.s32.totalorder %s15_s18, 4  }
 0x52a   :  { %14 = sbr.rel (!%p12_p4) target bundleno = 1 (0x1), region = 70 }

</bundles_post_ra>
